<compile_context>
chip_gen: v7x
topology: tpu7x:2x2x1
jax: 0.10.0
libtpu: 0.0.40
codegen_flags: <defaults>
</compile_context>

<pallas_src>
import numpy as np
import jax
import jax.numpy as jnp
from jax import lax
from jax.experimental import pallas as pl
from jax.experimental.pallas import tpu as pltpu

LANE = 128


def _round_up(v, m):
    return (v + m - 1) // m * m


# ----------------------------------------------------------------------------
# Host-side (one-time) weight transforms
# ----------------------------------------------------------------------------
def _bilinear_matrix(in_size, out_size):
    """PyTorch F.interpolate(mode='bilinear', align_corners=False) as a (out, in) matrix."""
    o = np.arange(out_size, dtype=np.float64)
    scale = in_size / out_size
    src = np.maximum((o + 0.5) * scale - 0.5, 0.0)
    i0 = np.minimum(np.floor(src).astype(np.int64), in_size - 1)
    i1 = np.minimum(i0 + 1, in_size - 1)
    w1 = src - i0
    w0 = 1.0 - w1
    A = np.zeros((out_size, in_size), dtype=np.float32)
    A[np.arange(out_size), i0] += w0.astype(np.float32)
    A[np.arange(out_size), i1] += w1.astype(np.float32)
    return A


def _shifted(A, k):
    """Row-shift by (k-1) with zero fill: G[i] = A[i+k-1]  (3x3 conv, padding=1)."""
    S = A.shape[0]
    G = np.zeros_like(A)
    src = np.arange(S) + (k - 1)
    ok = (src >= 0) & (src < S)
    G[ok] = A[src[ok]]
    return G


def _pack_branch(H, W, S, wconv, bconv, wfc, bfc, batch, hw_pad, f_pad, nc_pad):
    """Fold resize+shift into P, and build block-diagonal (per-batch) weight matrices."""
    F_, C = wconv.shape[0], wconv.shape[1]
    NC = wfc.shape[0]
    Ah = _bilinear_matrix(H, S)                      # (S, H)
    Aw = _bilinear_matrix(W, S)                      # (S, W)
    hw_in = H * W
    nf = batch * f_pad
    nl = batch * nc_pad

    p_taps = []
    wbig = np.zeros((9, batch * C, nf), np.float32)
    for kh in range(3):
        for kw in range(3):
            tap = kh * 3 + kw
            P = np.kron(_shifted(Ah, kh), _shifted(Aw, kw))      # (S*S, H*W)
            P_pad = np.zeros((hw_pad, hw_in), np.float32)
            P_pad[: S * S] = P
            p_taps.append(P_pad)
            wt = wconv[:, :, kh, kw].T                           # (C, F)
            for b in range(batch):
                wbig[tap, b * C:(b + 1) * C, b * f_pad:b * f_pad + F_] = wt
    p_stack = np.concatenate(p_taps, axis=0)                     # (9*hw_pad, H*W)

    bconv_big = np.zeros((1, nf), np.float32)
    gap = np.zeros((1, hw_pad), np.float32)
    gap[0, : S * S] = 1.0 / float(S * S)
    wfc_big = np.zeros((nf, nl), np.float32)
    bfc_big = np.zeros((1, nl), np.float32)
    for b in range(batch):
        bconv_big[0, b * f_pad:b * f_pad + F_] = bconv
        wfc_big[b * f_pad:b * f_pad + F_, b * nc_pad:b * nc_pad + NC] = wfc.T
        bfc_big[0, b * nc_pad:b * nc_pad + NC] = bfc
    return p_stack, wbig, bconv_big, gap, wfc_big, bfc_big


def pack_ensemble_params(params, image_sizes, num_classes, batch, in_hw):
    H, W = in_hw
    C = params["wconv_a"].shape[1]
    f_pad = _round_up(max(params["wconv_a"].shape[0], params["wconv_b"].shape[0]), LANE)
    nc_pad = _round_up(num_classes, LANE)
    hw_pad = _round_up(max(image_sizes[0] ** 2, image_sizes[1] ** 2), 8)
    branches = []
    for suf, s in (("a", image_sizes[0]), ("b", image_sizes[1])):
        branches.append(_pack_branch(
            H, W, s,
            np.asarray(params[f"wconv_{suf}"], np.float32),
            np.asarray(params[f"bconv_{suf}"], np.float32),
            np.asarray(params[f"wfc_{suf}"], np.float32),
            np.asarray(params[f"bfc_{suf}"], np.float32),
            batch, hw_pad, f_pad, nc_pad))
    stack = lambda i, dt: jnp.asarray(np.stack([br[i] for br in branches]), dt)
    return {
        "p": stack(0, jnp.bfloat16),          # (2, 9*hw_pad, H*W)
        "wbig": stack(1, jnp.float32),        # (2, 9, B*C, B*Fpad)
        "bconv": stack(2, jnp.float32),       # (2, 1, B*Fpad)
        "gap": stack(3, jnp.float32),         # (2, 1, hw_pad)
        "wfc": stack(4, jnp.bfloat16),        # (2, B*Fpad, B*NCpad)
        "bfc": stack(5, jnp.float32),         # (2, 1, B*NCpad)
        "meta": dict(batch=batch, channels=C, hw_in=H * W, hw_pad=hw_pad,
                     f_pad=f_pad, nc_pad=nc_pad, num_classes=num_classes),
    }


# ----------------------------------------------------------------------------
# The fused kernel: one grid step == one ensemble branch
# ----------------------------------------------------------------------------
def _ensemble_kernel(x_ref, p_ref, wbig_ref, bconv_ref, gap_ref, wfc_ref,
                     bfc_ref, o_ref):
    hw_pad = gap_ref.shape[-1]
    # Resize + all 9 conv-tap shifts in one lane-dense bf16 MXU matmul.
    z = jnp.dot(p_ref[0], x_ref[...],
                preferred_element_type=jnp.float32)              # (9*hw_pad, B*C) f32
    wbig = wbig_ref[0]                                           # (9, B*C, B*Fpad) f32
    feat = jnp.zeros((hw_pad, wbig.shape[-1]), jnp.float32)
    for tap in range(9):                                         # unrolled; conv = 9 matmuls
        feat = feat + jnp.dot(z[tap * hw_pad:(tap + 1) * hw_pad, :], wbig[tap],
                              preferred_element_type=jnp.float32)
    feat = jnp.maximum(feat + bconv_ref[0], 0.0)                 # bias + ReLU in f32
    pooled = jnp.dot(gap_ref[0], feat,
                     preferred_element_type=jnp.float32)         # GAP as MXU matvec -> (1, B*Fpad)
    logits = jnp.dot(pooled.astype(jnp.bfloat16), wfc_ref[0],
                     preferred_element_type=jnp.float32) + bfc_ref[0]
    o_ref[0] = logits.astype(o_ref.dtype)                        # lane-dense (1, B*NCpad) store


def classification_model_forward(x, packed):
    meta = packed["meta"]
    B, C = meta["batch"], meta["channels"]
    hw_in, hw_pad = meta["hw_in"], meta["hw_pad"]
    f_pad, nc_pad = meta["f_pad"], meta["nc_pad"]
    num_classes = meta["num_classes"]
    assert x.shape[0] == B and x.shape[1] == C and x.shape[2] * x.shape[3] == hw_in
    bc = B * C
    nf = B * f_pad
    nl = B * nc_pad

    # (B, C, H, W) -> (H*W, B*C); MXU inputs in bf16.
    x_t = x.reshape(bc, hw_in).T.astype(jnp.bfloat16)

    out = pl.pallas_call(
        _ensemble_kernel,
        out_shape=jax.ShapeDtypeStruct((2, 1, nl), jnp.float32),
        grid=(2,),
        in_specs=[
            pl.BlockSpec((hw_in, bc), lambda br: (0, 0)),
            pl.BlockSpec((1, 9 * hw_pad, hw_in), lambda br: (br, 0, 0)),
            pl.BlockSpec((1, 9, bc, nf), lambda br: (br, 0, 0, 0)),
            pl.BlockSpec((1, 1, nf), lambda br: (br, 0, 0)),
            pl.BlockSpec((1, 1, hw_pad), lambda br: (br, 0, 0)),
            pl.BlockSpec((1, nf, nl), lambda br: (br, 0, 0)),
            pl.BlockSpec((1, 1, nl), lambda br: (br, 0, 0)),
        ],
        out_specs=pl.BlockSpec((1, 1, nl), lambda br: (br, 0, 0)),
        compiler_params=pltpu.CompilerParams(
            dimension_semantics=("parallel",)),   # v7x: one branch per TensorCore
    )(x_t, packed["p"], packed["wbig"], packed["bconv"], packed["gap"],
      packed["wfc"], packed["bfc"])

    # EnsembleAverage: (logits_a + logits_b) / 2 on two tiny rows (plain jnp keeps the
    # two branch grid-steps independent / megacore-parallel instead of serializing).
    avg = 0.5 * (out[0, 0] + out[1, 0])                          # (B*NCpad,)
    return avg.reshape(B, nc_pad)[:, :num_classes]


# ----------------------------------------------------------------------------
# Pure-JAX (XLA) reference for correctness
# ----------------------------------------------------------------------------
def _reference_forward(x, params, image_sizes, num_classes):
    def branch(wconv, bconv, wfc, bfc, s):
        Ah = jnp.asarray(_bilinear_matrix(x.shape[2], s))
        Aw = jnp.asarray(_bilinear_matrix(x.shape[3], s))
        t = jnp.einsum('oh,bchw->bcow', Ah, x)
        r = jnp.einsum('qw,bcow->bcoq', Aw, t)
        feat = lax.conv_general_dilated(r, wconv, (1, 1), ((1, 1), (1, 1)),
                                        dimension_numbers=('NCHW', 'OIHW', 'NCHW'))
        feat = jnp.maximum(feat + bconv[None, :, None, None], 0.0)
        pooled = feat.mean(axis=(2, 3))
        return pooled @ wfc.T + bfc[None, :]
    la = branch(params["wconv_a"], params["bconv_a"], params["wfc_a"], params["bfc_a"],
                image_sizes[0])
    lb = branch(params["wconv_b"], params["bconv_b"], params["wfc_b"], params["bfc_b"],
                image_sizes[1])
    return 0.5 * (la + lb)


def init_params(key, in_channels, feat_a, feat_b, num_classes):
    ks = jax.random.split(key, 8)
    scale = 0.1
    return {
        "wconv_a": scale * jax.random.normal(ks[0], (feat_a, in_channels, 3, 3), jnp.float32),
        "bconv_a": scale * jax.random.normal(ks[1], (feat_a,), jnp.float32),
        "wfc_a":   scale * jax.random.normal(ks[2], (num_classes, feat_a), jnp.float32),
        "bfc_a":   scale * jax.random.normal(ks[3], (num_classes,), jnp.float32),
        "wconv_b": scale * jax.random.normal(ks[4], (feat_b, in_channels, 3, 3), jnp.float32),
        "bconv_b": scale * jax.random.normal(ks[5], (feat_b,), jnp.float32),
        "wfc_b":   scale * jax.random.normal(ks[6], (num_classes, feat_b), jnp.float32),
        "bfc_b":   scale * jax.random.normal(ks[7], (num_classes,), jnp.float32),
    }


if __name__ == "__main__":
    key = jax.random.PRNGKey(0)
    k_x, k_p = jax.random.split(key)

    B, C, H, W = 2, 3, 16, 16          # NCHW, like PyTorch
    image_sizes = (12, 8)              # the two ensemble input resolutions
    num_classes = 10
    feat_a, feat_b = 24, 16            # surrogate backbone feature widths

    x = jax.random.normal(k_x, (B, C, H, W), jnp.float32)
    params = init_params(k_p, C, feat_a, feat_b, num_classes)

    packed = pack_ensemble_params(params, image_sizes, num_classes, B, (H, W))
    out = classification_model_forward(x, packed)
    out = jax.block_until_ready(out)

    assert out.shape == (B, num_classes) and out.dtype == jnp.float32
    ref = jax.block_until_ready(_reference_forward(x, params, image_sizes, num_classes))
    np.testing.assert_allclose(np.asarray(out), np.asarray(ref), rtol=0.1, atol=0.03)
    print("KERNEL_OK")
</pallas_src>

<mosaic_0001>
module attributes {stable_mosaic.version = 11 : i64} {
  func.func @_ensemble_kernel(%arg0: i32, %arg1: memref<256x6xbf16, #tpu.memory_space<vmem>>, %arg2: memref<1x1296x256xbf16, #tpu.memory_space<vmem>>, %arg3: memref<1x9x6x256xf32, #tpu.memory_space<vmem>>, %arg4: memref<1x1x256xf32, #tpu.memory_space<vmem>>, %arg5: memref<1x1x144xf32, #tpu.memory_space<vmem>>, %arg6: memref<1x256x256xbf16, #tpu.memory_space<vmem>>, %arg7: memref<1x1x256xf32, #tpu.memory_space<vmem>>, %arg8: memref<1x1x256xf32, #tpu.memory_space<vmem>>) attributes {dimension_semantics = [#tpu.dimension_semantics<parallel>], iteration_bounds = array<i64: 2>, scalar_prefetch = 0 : i64, scratch_operands = 0 : i64, tpu.core_type = #tpu.core_type<tc>, window_params = [{pipeline_mode = #tpu.pipeline_mode<synchronous>, transform_indices = @transform_0, window_bounds = array<i64: 256, 6>}, {transform_indices = @transform_1, window_bounds = array<i64: 1, 1296, 256>}, {transform_indices = @transform_2, window_bounds = array<i64: 1, 9, 6, 256>}, {transform_indices = @transform_3, window_bounds = array<i64: 1, 1, 256>}, {transform_indices = @transform_4, window_bounds = array<i64: 1, 1, 144>}, {transform_indices = @transform_5, window_bounds = array<i64: 1, 256, 256>}, {transform_indices = @transform_6, window_bounds = array<i64: 1, 1, 256>}, {transform_indices = @transform_7, window_bounds = array<i64: 1, 1, 256>}]} {
    %c0 = arith.constant 0 : index
    %c0_0 = arith.constant 0 : index
    %c0_1 = arith.constant 0 : index
    %0 = vector.load %arg2[%c0, %c0_0, %c0_1] : memref<1x1296x256xbf16, #tpu.memory_space<vmem>>, vector<1x1296x256xbf16>
    %1 = vector.shape_cast %0 : vector<1x1296x256xbf16> to vector<1296x256xbf16>
    %c0_2 = arith.constant 0 : index
    %c0_3 = arith.constant 0 : index
    %2 = vector.load %arg1[%c0_2, %c0_3] : memref<256x6xbf16, #tpu.memory_space<vmem>>, vector<256x6xbf16>
    %cst = arith.constant dense<0.000000e+00> : vector<1296x6xf32>
    %3 = tpu.matmul %1, %2, %cst {dimension_numbers = #tpu.dot_dimension_numbers<[1], [0], [0], [1], [0, 0, 1, 1], [], []>} : vector<1296x256xbf16>, vector<256x6xbf16>, vector<1296x6xf32> -> vector<1296x6xf32>
    %c0_4 = arith.constant 0 : index
    %c0_5 = arith.constant 0 : index
    %c0_6 = arith.constant 0 : index
    %c0_7 = arith.constant 0 : index
    %4 = vector.load %arg3[%c0_4, %c0_5, %c0_6, %c0_7] : memref<1x9x6x256xf32, #tpu.memory_space<vmem>>, vector<1x9x6x256xf32>
    %5 = vector.shape_cast %4 : vector<1x9x6x256xf32> to vector<9x6x256xf32>
    %cst_8 = arith.constant 0.000000e+00 : f32
    %6 = vector.broadcast %cst_8 : f32 to vector<144x256xf32>
    %7 = vector.extract_strided_slice %3 {offsets = [0, 0], sizes = [144, 6], strides = [1, 1]} : vector<1296x6xf32> to vector<144x6xf32>
    %8 = vector.extract_strided_slice %5 {offsets = [0, 0, 0], sizes = [1, 6, 256], strides = [1, 1, 1]} : vector<9x6x256xf32> to vector<1x6x256xf32>
    %9 = vector.shape_cast %8 : vector<1x6x256xf32> to vector<6x256xf32>
    %cst_9 = arith.constant dense<0.000000e+00> : vector<144x256xf32>
    %10 = tpu.matmul %7, %9, %cst_9 {dimension_numbers = #tpu.dot_dimension_numbers<[1], [0], [0], [1], [0, 0, 1, 1], [], []>} : vector<144x6xf32>, vector<6x256xf32>, vector<144x256xf32> -> vector<144x256xf32>
    %11 = arith.addf %6, %10 : vector<144x256xf32>
    %12 = vector.extract_strided_slice %3 {offsets = [144, 0], sizes = [144, 6], strides = [1, 1]} : vector<1296x6xf32> to vector<144x6xf32>
    %13 = vector.extract_strided_slice %5 {offsets = [1, 0, 0], sizes = [1, 6, 256], strides = [1, 1, 1]} : vector<9x6x256xf32> to vector<1x6x256xf32>
    %14 = vector.shape_cast %13 : vector<1x6x256xf32> to vector<6x256xf32>
    %cst_10 = arith.constant dense<0.000000e+00> : vector<144x256xf32>
    %15 = tpu.matmul %12, %14, %cst_10 {dimension_numbers = #tpu.dot_dimension_numbers<[1], [0], [0], [1], [0, 0, 1, 1], [], []>} : vector<144x6xf32>, vector<6x256xf32>, vector<144x256xf32> -> vector<144x256xf32>
    %16 = arith.addf %11, %15 : vector<144x256xf32>
    %17 = vector.extract_strided_slice %3 {offsets = [288, 0], sizes = [144, 6], strides = [1, 1]} : vector<1296x6xf32> to vector<144x6xf32>
    %18 = vector.extract_strided_slice %5 {offsets = [2, 0, 0], sizes = [1, 6, 256], strides = [1, 1, 1]} : vector<9x6x256xf32> to vector<1x6x256xf32>
    %19 = vector.shape_cast %18 : vector<1x6x256xf32> to vector<6x256xf32>
    %cst_11 = arith.constant dense<0.000000e+00> : vector<144x256xf32>
    %20 = tpu.matmul %17, %19, %cst_11 {dimension_numbers = #tpu.dot_dimension_numbers<[1], [0], [0], [1], [0, 0, 1, 1], [], []>} : vector<144x6xf32>, vector<6x256xf32>, vector<144x256xf32> -> vector<144x256xf32>
    %21 = arith.addf %16, %20 : vector<144x256xf32>
    %22 = vector.extract_strided_slice %3 {offsets = [432, 0], sizes = [144, 6], strides = [1, 1]} : vector<1296x6xf32> to vector<144x6xf32>
    %23 = vector.extract_strided_slice %5 {offsets = [3, 0, 0], sizes = [1, 6, 256], strides = [1, 1, 1]} : vector<9x6x256xf32> to vector<1x6x256xf32>
    %24 = vector.shape_cast %23 : vector<1x6x256xf32> to vector<6x256xf32>
    %cst_12 = arith.constant dense<0.000000e+00> : vector<144x256xf32>
    %25 = tpu.matmul %22, %24, %cst_12 {dimension_numbers = #tpu.dot_dimension_numbers<[1], [0], [0], [1], [0, 0, 1, 1], [], []>} : vector<144x6xf32>, vector<6x256xf32>, vector<144x256xf32> -> vector<144x256xf32>
    %26 = arith.addf %21, %25 : vector<144x256xf32>
    %27 = vector.extract_strided_slice %3 {offsets = [576, 0], sizes = [144, 6], strides = [1, 1]} : vector<1296x6xf32> to vector<144x6xf32>
    %28 = vector.extract_strided_slice %5 {offsets = [4, 0, 0], sizes = [1, 6, 256], strides = [1, 1, 1]} : vector<9x6x256xf32> to vector<1x6x256xf32>
    %29 = vector.shape_cast %28 : vector<1x6x256xf32> to vector<6x256xf32>
    %cst_13 = arith.constant dense<0.000000e+00> : vector<144x256xf32>
    %30 = tpu.matmul %27, %29, %cst_13 {dimension_numbers = #tpu.dot_dimension_numbers<[1], [0], [0], [1], [0, 0, 1, 1], [], []>} : vector<144x6xf32>, vector<6x256xf32>, vector<144x256xf32> -> vector<144x256xf32>
    %31 = arith.addf %26, %30 : vector<144x256xf32>
    %32 = vector.extract_strided_slice %3 {offsets = [720, 0], sizes = [144, 6], strides = [1, 1]} : vector<1296x6xf32> to vector<144x6xf32>
    %33 = vector.extract_strided_slice %5 {offsets = [5, 0, 0], sizes = [1, 6, 256], strides = [1, 1, 1]} : vector<9x6x256xf32> to vector<1x6x256xf32>
    %34 = vector.shape_cast %33 : vector<1x6x256xf32> to vector<6x256xf32>
    %cst_14 = arith.constant dense<0.000000e+00> : vector<144x256xf32>
    %35 = tpu.matmul %32, %34, %cst_14 {dimension_numbers = #tpu.dot_dimension_numbers<[1], [0], [0], [1], [0, 0, 1, 1], [], []>} : vector<144x6xf32>, vector<6x256xf32>, vector<144x256xf32> -> vector<144x256xf32>
    %36 = arith.addf %31, %35 : vector<144x256xf32>
    %37 = vector.extract_strided_slice %3 {offsets = [864, 0], sizes = [144, 6], strides = [1, 1]} : vector<1296x6xf32> to vector<144x6xf32>
    %38 = vector.extract_strided_slice %5 {offsets = [6, 0, 0], sizes = [1, 6, 256], strides = [1, 1, 1]} : vector<9x6x256xf32> to vector<1x6x256xf32>
    %39 = vector.shape_cast %38 : vector<1x6x256xf32> to vector<6x256xf32>
    %cst_15 = arith.constant dense<0.000000e+00> : vector<144x256xf32>
    %40 = tpu.matmul %37, %39, %cst_15 {dimension_numbers = #tpu.dot_dimension_numbers<[1], [0], [0], [1], [0, 0, 1, 1], [], []>} : vector<144x6xf32>, vector<6x256xf32>, vector<144x256xf32> -> vector<144x256xf32>
    %41 = arith.addf %36, %40 : vector<144x256xf32>
    %42 = vector.extract_strided_slice %3 {offsets = [1008, 0], sizes = [144, 6], strides = [1, 1]} : vector<1296x6xf32> to vector<144x6xf32>
    %43 = vector.extract_strided_slice %5 {offsets = [7, 0, 0], sizes = [1, 6, 256], strides = [1, 1, 1]} : vector<9x6x256xf32> to vector<1x6x256xf32>
    %44 = vector.shape_cast %43 : vector<1x6x256xf32> to vector<6x256xf32>
    %cst_16 = arith.constant dense<0.000000e+00> : vector<144x256xf32>
    %45 = tpu.matmul %42, %44, %cst_16 {dimension_numbers = #tpu.dot_dimension_numbers<[1], [0], [0], [1], [0, 0, 1, 1], [], []>} : vector<144x6xf32>, vector<6x256xf32>, vector<144x256xf32> -> vector<144x256xf32>
    %46 = arith.addf %41, %45 : vector<144x256xf32>
    %47 = vector.extract_strided_slice %3 {offsets = [1152, 0], sizes = [144, 6], strides = [1, 1]} : vector<1296x6xf32> to vector<144x6xf32>
    %48 = vector.extract_strided_slice %5 {offsets = [8, 0, 0], sizes = [1, 6, 256], strides = [1, 1, 1]} : vector<9x6x256xf32> to vector<1x6x256xf32>
    %49 = vector.shape_cast %48 : vector<1x6x256xf32> to vector<6x256xf32>
    %cst_17 = arith.constant dense<0.000000e+00> : vector<144x256xf32>
    %50 = tpu.matmul %47, %49, %cst_17 {dimension_numbers = #tpu.dot_dimension_numbers<[1], [0], [0], [1], [0, 0, 1, 1], [], []>} : vector<144x6xf32>, vector<6x256xf32>, vector<144x256xf32> -> vector<144x256xf32>
    %51 = arith.addf %46, %50 : vector<144x256xf32>
    %c0_18 = arith.constant 0 : index
    %c0_19 = arith.constant 0 : index
    %c0_20 = arith.constant 0 : index
    %52 = vector.load %arg4[%c0_18, %c0_19, %c0_20] : memref<1x1x256xf32, #tpu.memory_space<vmem>>, vector<1x1x256xf32>
    %53 = vector.shape_cast %52 : vector<1x1x256xf32> to vector<1x256xf32>
    %54 = vector.broadcast %53 : vector<1x256xf32> to vector<144x256xf32>
    %55 = arith.addf %51, %54 : vector<144x256xf32>
    %cst_21 = arith.constant 0.000000e+00 : f32
    %56 = vector.broadcast %cst_21 : f32 to vector<144x256xf32>
    %57 = arith.maximumf %55, %56 : vector<144x256xf32>
    %c0_22 = arith.constant 0 : index
    %c0_23 = arith.constant 0 : index
    %c0_24 = arith.constant 0 : index
    %58 = vector.load %arg5[%c0_22, %c0_23, %c0_24] : memref<1x1x144xf32, #tpu.memory_space<vmem>>, vector<1x1x144xf32>
    %59 = vector.shape_cast %58 : vector<1x1x144xf32> to vector<1x144xf32>
    %cst_25 = arith.constant dense<0.000000e+00> : vector<1x256xf32>
    %60 = tpu.matmul %59, %57, %cst_25 {dimension_numbers = #tpu.dot_dimension_numbers<[1], [0], [0], [1], [0, 0, 1, 1], [], []>} : vector<1x144xf32>, vector<144x256xf32>, vector<1x256xf32> -> vector<1x256xf32>
    %61 = arith.truncf %60 : vector<1x256xf32> to vector<1x256xbf16>
    %c0_26 = arith.constant 0 : index
    %c0_27 = arith.constant 0 : index
    %c0_28 = arith.constant 0 : index
    %62 = vector.load %arg6[%c0_26, %c0_27, %c0_28] : memref<1x256x256xbf16, #tpu.memory_space<vmem>>, vector<1x256x256xbf16>
    %63 = vector.shape_cast %62 : vector<1x256x256xbf16> to vector<256x256xbf16>
    %cst_29 = arith.constant dense<0.000000e+00> : vector<1x256xf32>
    %64 = tpu.matmul %61, %63, %cst_29 {dimension_numbers = #tpu.dot_dimension_numbers<[1], [0], [0], [1], [0, 0, 1, 1], [], []>} : vector<1x256xbf16>, vector<256x256xbf16>, vector<1x256xf32> -> vector<1x256xf32>
    %c0_30 = arith.constant 0 : index
    %c0_31 = arith.constant 0 : index
    %c0_32 = arith.constant 0 : index
    %65 = vector.load %arg7[%c0_30, %c0_31, %c0_32] : memref<1x1x256xf32, #tpu.memory_space<vmem>>, vector<1x1x256xf32>
    %66 = vector.shape_cast %65 : vector<1x1x256xf32> to vector<1x256xf32>
    %67 = arith.addf %64, %66 : vector<1x256xf32>
    %c0_33 = arith.constant 0 : index
    %c0_34 = arith.constant 0 : index
    %c0_35 = arith.constant 0 : index
    %68 = vector.load %arg8[%c0_33, %c0_34, %c0_35] : memref<1x1x256xf32, #tpu.memory_space<vmem>>, vector<1x1x256xf32>
    %69 = vector.shape_cast %68 : vector<1x1x256xf32> to vector<1x256xf32>
    %70 = vector.shape_cast %67 : vector<1x256xf32> to vector<1x1x256xf32>
    tpu.vector_store %arg8[%c0_33, %c0_34, %c0_35], %70 {strides = array<i32>} : memref<1x1x256xf32, #tpu.memory_space<vmem>>, vector<1x1x256xf32>,
    return
  }
  func.func @transform_0(%arg0: i32) -> (i32, i32) {
    %c0_i32 = arith.constant 0 : i32
    %c0_i32_0 = arith.constant 0 : i32
    %c0_i32_1 = arith.constant 0 : i32
    return %c0_i32, %c0_i32_0 : i32, i32
  }
  func.func @transform_1(%arg0: i32) -> (i32, i32, i32) {
    %c0_i32 = arith.constant 0 : i32
    %c0_i32_0 = arith.constant 0 : i32
    %c0_i32_1 = arith.constant 0 : i32
    return %arg0, %c0_i32, %c0_i32_0 : i32, i32, i32
  }
  func.func @transform_2(%arg0: i32) -> (i32, i32, i32, i32) {
    %c0_i32 = arith.constant 0 : i32
    %c0_i32_0 = arith.constant 0 : i32
    %c0_i32_1 = arith.constant 0 : i32
    %c0_i32_2 = arith.constant 0 : i32
    return %arg0, %c0_i32, %c0_i32_0, %c0_i32_1 : i32, i32, i32, i32
  }
  func.func @transform_3(%arg0: i32) -> (i32, i32, i32) {
    %c0_i32 = arith.constant 0 : i32
    %c0_i32_0 = arith.constant 0 : i32
    %c0_i32_1 = arith.constant 0 : i32
    return %arg0, %c0_i32, %c0_i32_0 : i32, i32, i32
  }
  func.func @transform_4(%arg0: i32) -> (i32, i32, i32) {
    %c0_i32 = arith.constant 0 : i32
    %c0_i32_0 = arith.constant 0 : i32
    %c0_i32_1 = arith.constant 0 : i32
    return %arg0, %c0_i32, %c0_i32_0 : i32, i32, i32
  }
  func.func @transform_5(%arg0: i32) -> (i32, i32, i32) {
    %c0_i32 = arith.constant 0 : i32
    %c0_i32_0 = arith.constant 0 : i32
    %c0_i32_1 = arith.constant 0 : i32
    return %arg0, %c0_i32, %c0_i32_0 : i32, i32, i32
  }
  func.func @transform_6(%arg0: i32) -> (i32, i32, i32) {
    %c0_i32 = arith.constant 0 : i32
    %c0_i32_0 = arith.constant 0 : i32
    %c0_i32_1 = arith.constant 0 : i32
    return %arg0, %c0_i32, %c0_i32_0 : i32, i32, i32
  }
  func.func @transform_7(%arg0: i32) -> (i32, i32, i32) {
    %c0_i32 = arith.constant 0 : i32
    %c0_i32_0 = arith.constant 0 : i32
    %c0_i32_1 = arith.constant 0 : i32
    return %arg0, %c0_i32, %c0_i32_0 : i32, i32, i32
  }
}

</mosaic_0001>

<bundles_post_ra>
// kernel: tpu_custom_call.1
= control target key start
LH: loop header
LB: loop body
LE: loop exit
PB: predicated region body
PF: predicated region fallthrough
CT: control target
= control target key end

     0   :  { %s8040_s0 = inlined_call_operand.vmem [shape: bf16[256,6], index: 0, kind: input, shape index: {}]   ;;  %s8041_s1 = inlined_call_operand.hbm [shape: bf16[2,1296,256], index: 1, kind: input, shape index: {}]   ;;  %s8042_s2 = inlined_call_operand.vmem [shape: f32[2,9,6,256], index: 2, kind: input, shape index: {}]   ;;  %s8043_s3 = inlined_call_operand.hbm [shape: f32[2,1,256], index: 3, kind: input, shape index: {}]   ;;  %s8044_s4 = inlined_call_operand.hbm [shape: f32[2,1,144], index: 4, kind: input, shape index: {}]   ;;  %s8045_s5 = inlined_call_operand.hbm [shape: bf16[2,256,256], index: 5, kind: input, shape index: {}]   ;;  %s8046_s6 = inlined_call_operand.hbm [shape: f32[2,1,256], index: 6, kind: input, shape index: {}]   ;;  %s8047_s7 = inlined_call_operand.hbm [shape: f32[2,1,256], index: 7, kind: output, shape index: {}]  }
   0x1   :  { %8060 = sst [smem:[#allocation22_spill]] %s8042_s2 }
   0x2   :  { %8061 = sst [smem:[#allocation23_spill]] %s8043_s3 }
   0x3   :  { %8062 = sst [smem:[#allocation24_spill]] %s8045_s5 }
   0x4   :  { %8063 = sst [smem:[#allocation25_spill]] %s8047_s7 }
   0x5   :  { %12 = vsyncpa [#allocation3], 0 }
   0x6   :  { %14 = vsyncpa [#allocation3 + $0x1], 0 }
   0x7   :  { %15 = vsyncpa [#allocation6], 0 }
   0x8   :  { %17 = vsyncpa [#allocation6 + $0x1], 0 }
   0x9   :  { %18 = vsyncpa [#allocation9], 0 }
   0xa   :  { %20 = vsyncpa [#allocation9 + $0x1], 0 }
   0xb   :  { %21 = vsyncpa [#allocation4], 0 }
   0xc   :  { %23 = vsyncpa [#allocation4 + $0x1], 0  ;;  %s6645_s24 = smov 0   ;;  %s6647_s25 = smov 0  }
   0xd   :  { %s6649_s26 = smov 0   ;;  %s6651_s27 = smov 0  }
   0xe LB: > { %8064 = sst [smem:[#allocation16_spill]] %s6580_s24  ;;  %s6666_s28 = sadd.s32 4294967295, %s6592_s27   ;;  %s6592_s27 = sphi %s6651_s27, %s8090_s27   ;;  %s6588_s26 = sphi %s6649_s26, %s8092_s26   ;;  %s6584_s25 = sphi %s6647_s25, %s8094_s25   ;;  %s6580_s24 = sphi %s6645_s24, %s8093_s24  }
   0xf   : > { %8065 = sst [smem:[#allocation17_spill]] %s6588_s26  ;;  %s5238_s29 = sadd.s32 4294967294, %s6592_s27  }
  0x10   : > { %s6670_s30 = sadd.s32 1, %s6592_s27   ;;  %s57_s8 = sadd.s32 1, %s6588_s26 }
  0x11   : > { %8066 = sst [smem:[#allocation18_spill]] %s6670_s30  ;;  %s54_s9 = ssub.s32 %s6592_s27, %s6670_s30 }
  0x12   : > { %p64_p0 = scmp.ne.s32.totalorder %s6588_s26, %s6584_s25  ;;  %p55_p1 = scmp.eq.s32.totalorder %s54_s9, 0 }
  0x13   : > { %p65_p2 = scmp.eq.s32.totalorder %s6592_s27, 0  ;;  %p70_p3 = scmp.ne.s32.totalorder %s6584_s25, %s6580_s24 }
  0x14   : > { %p71_p4 = scmp.eq.s32.totalorder %s6666_s28, 0  ;;  %p224_p7 = scmp.eq.s32.totalorder %s6666_s28, 1 }
  0x15   : > { %s6682_s10 = scalar_select %p55_p1, %s6588_s26, %s57_s8  }
  0x16   : > { %p66_p5 = por %p65_p2, %p64_p0  ;;  %p6684_p6 = por %p71_p4, %p70_p3 }
  0x17   : > { %8067 = sst [smem:[#allocation19_spill]] %s6682_s10  ;;  %p230_p8 = scmp.eq.s32.totalorder %s5238_s29, 1 }
  0x18   : > { %s8068_s11 = scalar_select %p6684_p6, 1, 0 }
  0x19   : > { %p6022_p10 = scmp.lt.s32.totalorder %s6592_s27, 2  ;;  %p6691_p11 = por %p224_p7, %p64_p0 }
  0x1a   : > { %p6695_p12 = por %p230_p8, %p70_p3  ;;  %s6700_s14 = sand.u32 1, %s6588_s26  }
  0x1b   : > { %s8069_s12 = scalar_select %p6691_p11, 1, 0 }
  0x1c   : > { %s8071_s13 = scalar_select %p6695_p12, 1, 0 }
  0x1d   : > { %8070 = sst [smem:[#allocation20_spill]] %s8069_s12  ;;  %p6702_p13 = pnand %p6022_p10, %p66_p5 }
  0x1e   : > { %8072 = sst [smem:[#allocation21_spill]] %s8071_s13  ;;  %s8049_s16 = sand.u32 1, %s6592_s27  }
  0x1f   : > { %s8073_s15 = scalar_select %p6702_p13, 1, 0 }
  0x20   : > { %s6708_s17 = sshll.u32 %s6700_s14, 1  ;;  %s6711_s18 = sshll.u32 %s6592_s27, 5 }
  0x21   : > { %s8074_s3 = sld [smem:[#allocation23_spill]]  ;;  %s286_s22 = scalar_lea.vmem [#allocation5], %s6708_s17 }
  0x22   : > { %s294_s23 = sshll.u32 %s286_s22, 4  ;;  %s6724_s29 = scalar_lea.sflag [#allocation6], %s8049_s16  ;;  %s6720_s23 = int_to_ptr.vmem [resolvable:$true] %s294_s23 }
  0x23   : > { %p6730_p1 = pneg %p6702_p13 }
  0x27   : > { %s6717_s21 = scalar_lea.hbm %s8074_s3, %s6711_s18  ;;  %s6373_s22 = scalar_lea.hbm %s8074_s3, 64 }
  0x28   : > { %s6368_s8 = scalar_lea.hbm %s6717_s21, 32  ;;  %p6374_p4 = scmp.lt.u32.totalorder %s6717_s21, %s8074_s3 }
  0x29   : > { %p6369_p0 = scmp.ne.s32.totalorder %s6717_s21, %s6368_s8  ;;  %p6375_p5 = scmp.lt.u32.totalorder %s6373_s22, %s6368_s8 }
  0x2a   : > { %p6377_p8 = scmp.lt.u32.totalorder %s6368_s8, %s6717_s21 }
  0x2b   : > { %p6371_p2 = pnand %p6730_p1, %p6369_p0  ;;  %p6376_p7 = por %p6375_p5, %p6374_p4 }
  0x2d   : > { %p6372_p3 = pneg %p6371_p2  ;;  %p6378_p10 = por %p6377_p8, %p6376_p7 }
  0x2f   : > { %p6379_p9 = pnand %p6378_p10, %p6372_p3 }
  0x31   : > { %6382 = shalt.err (!%p6379_p9)
}
  0x32   : > { %s6383_s16 = scalar_lea.vmem %s6720_s23, 32  ;;  %s6594_s19 = smov [#allocation5]  }
  0x33   : > { %p6384_p0 = scmp.ne.s32.totalorder %s6720_s23, %s6383_s16  ;;  %s6388_s20 = sshll.u32 %s6594_s19, 4  ;;  %s6389_s20 = int_to_ptr.vmem [resolvable:$false] %s6388_s20 }
  0x34   : > { %s6390_s26 = scalar_lea.vmem %s6389_s20, 64  ;;  %p6391_p11 = scmp.lt.s32.totalorder %s6720_s23, %s6389_s20 }
  0x35   : > { %p6386_p2 = pnand %p6384_p0, %p6730_p1  ;;  %p6392_p6 = scmp.lt.s32.totalorder %s6390_s26, %s6383_s16 }
  0x37   : > { %p6387_p12 = pneg %p6386_p2  ;;  %p6393_p4 = por %p6392_p6, %p6391_p11 }
  0x39   : > { %p6394_p5 = pnand %p6393_p4, %p6387_p12 }
  0x3b   : > { %6397 = shalt.err (!%p6394_p5)
}
  0x3c   : > { %6008 = dma.hbm_to_vmem [thread:$0]  (!%p6702_p13), %s6717_s21, 32, %s6720_s23, %s6724_s29  }
  0x3d   : > { %p5254_p9 = scmp.ge.s32.totalorder %s6592_s27, 1  ;;  %p358_p3 = scmp.lt.s32.totalorder %s6592_s27, 3 }
  0x3e   : > { %s5248_s16 = sshll.u32 %s6700_s14, 8  ;;  %s5659_s8 = sshll.u32 %s6592_s27, 12 }
  0x3f   : > { %p6756_p7 = pnand %p5254_p9, %p358_p3  ;;  %s8077_s5 = sld [smem:[#allocation24_spill]] }
  0x40   : > { %s324_s26 = scalar_lea.vmem [#allocation8], %s5248_s16  ;;  %s8078_s21 = sand.u32 1, %s6592_s27  }
  0x41   : > { %s8076_s10 = scalar_select %p6756_p7, 1, 0 }
  0x42   : > { %s331_s3 = sshll.u32 %s324_s26, 4  ;;  %s6771_s23 = scalar_lea.sflag [#allocation9], %s8078_s21  ;;  %s6767_s3 = int_to_ptr.vmem [resolvable:$true] %s331_s3 }
  0x45   : > { %s6765_s20 = scalar_lea.hbm %s8077_s5, %s5659_s8  ;;  %s6403_s8 = scalar_lea.hbm %s8077_s5, 8192 }
  0x46   : > { %s6398_s30 = scalar_lea.hbm %s6765_s20, 4096  ;;  %p6404_p8 = scmp.lt.u32.totalorder %s6765_s20, %s8077_s5 }
  0x47   : > { %p6399_p6 = scmp.ne.s32.totalorder %s6765_s20, %s6398_s30  ;;  %p6405_p10 = scmp.lt.u32.totalorder %s6403_s8, %s6398_s30 }
  0x48   : > { %p6407_p2 = scmp.lt.u32.totalorder %s6398_s30, %s6765_s20 }
  0x49   : > { %p6401_p11 = pnand %p6399_p6, %p6730_p1  ;;  %p6406_p0 = por %p6405_p10, %p6404_p8 }
  0x4b   : > { %p6402_p12 = pneg %p6401_p11  ;;  %p6408_p4 = por %p6407_p2, %p6406_p0 }
  0x4d   : > { %p6409_p5 = pnand %p6408_p4, %p6402_p12 }
  0x4f   : > { %6412 = shalt.err (!%p6409_p5)
}
  0x50   : > { %s6413_s16 = scalar_lea.vmem %s6767_s3, 4096  ;;  %s6595_s13 = smov [#allocation8]  }
  0x51   : > { %p6414_p9 = scmp.ne.s32.totalorder %s6767_s3, %s6413_s16  ;;  %s6418_s26 = sshll.u32 %s6595_s13, 4  ;;  %s6419_s26 = int_to_ptr.vmem [resolvable:$false] %s6418_s26 }
  0x52   : > { %s6420_s24 = scalar_lea.vmem %s6419_s26, 8192  ;;  %p6421_p11 = scmp.lt.s32.totalorder %s6767_s3, %s6419_s26 }
  0x53   : > { %p6416_p3 = pnand %p6414_p9, %p6730_p1  ;;  %p6422_p7 = scmp.lt.s32.totalorder %s6420_s24, %s6413_s16 }
  0x55   : > { %p6417_p6 = pneg %p6416_p3  ;;  %p6423_p8 = por %p6422_p7, %p6421_p11 }
  0x57   : > { %p6424_p10 = pnand %p6423_p8, %p6417_p6 }
  0x59   : > { %6427 = shalt.err (!%p6424_p10)
}
  0x5a   : > { %s6596_s30 = smov 128   ;;  %s6597_s21 = smov 8  }
  0x5b   : > { %6014 = dma.hbm_to_vmem [thread:$0]  (!%p6702_p13), %s6765_s20, 4096, %s6767_s3, %s6771_s23, %s6596_s30, %s6596_s30, %s6597_s21  }
  0x5c   : > { %s5986_s22 = smul.u32 1296, %s6700_s14  ;;  %s6804_s13 = scalar_lea.hbm %s8044_s4, %s6711_s18 }
  0x5d   : > { %s5987_s8 = smul.u32 20736, %s6592_s27  ;;  %s305_s26 = scalar_lea.vmem [#allocation7], %s6708_s17 }
  0x5e   : > { %s313_s24 = sshll.u32 %s305_s26, 4  ;;  %s257_s2 = scalar_lea.vmem [#allocation2], %s5986_s22  ;;  %s6814_s24 = int_to_ptr.vmem [resolvable:$true] %s313_s24 }
  0x5f   : > { %s6810_s12 = scalar_lea.hbm %s8041_s1, %s5987_s8  ;;  %s264_s3 = sshll.u32 %s257_s2, 4  ;;  %s6812_s3 = int_to_ptr.vmem [resolvable:$true] %s264_s3 }
  0x60   : > { %s254_s20 = scalar_lea.sflag [#allocation3], %s6700_s14  ;;  %s6428_s19 = scalar_lea.hbm %s6810_s12, 20736 }
  0x61   : > { %p6429_p7 = scmp.ne.s32.totalorder %s6810_s12, %s6428_s19  ;;  %s6433_s7 = scalar_lea.hbm %s8041_s1, 41472 }
  0x62   : > { %p6434_p2 = scmp.lt.u32.totalorder %s6810_s12, %s8041_s1  ;;  %p6435_p4 = scmp.lt.u32.totalorder %s6433_s7, %s6428_s19 }
  0x63   : > { %p6431_p12 = pnand %p6429_p7, %p6730_p1  ;;  %p6437_p9 = scmp.lt.u32.totalorder %s6428_s19, %s6810_s12 }
  0x64   : > { %p6436_p5 = por %p6435_p4, %p6434_p2 }
  0x65   : > { %p6432_p0 = pneg %p6431_p12 }
  0x66   : > { %p6438_p3 = por %p6437_p9, %p6436_p5 }
  0x68   : > { %p6439_p6 = pnand %p6438_p3, %p6432_p0 }
  0x6a   : > { %6442 = shalt.err (!%p6439_p6)
}
  0x6b   : > { %s6443_s2 = scalar_lea.vmem %s6812_s3, 20736  ;;  %s6598_s22 = smov [#allocation2]  }
  0x6c   : > { %p6444_p11 = scmp.ne.s32.totalorder %s6812_s3, %s6443_s2  ;;  %s6448_s16 = sshll.u32 %s6598_s22, 4  ;;  %s6449_s16 = int_to_ptr.vmem [resolvable:$false] %s6448_s16 }
  0x6d   : > { %s6450_s5 = scalar_lea.vmem %s6449_s16, 41472  ;;  %p6451_p7 = scmp.lt.s32.totalorder %s6812_s3, %s6449_s16 }
  0x6e   : > { %p6446_p8 = pnand %p6444_p11, %p6730_p1  ;;  %p6452_p12 = scmp.lt.s32.totalorder %s6450_s5, %s6443_s2 }
  0x70   : > { %p6447_p10 = pneg %p6446_p8  ;;  %p6453_p2 = por %p6452_p12, %p6451_p7 }
  0x72   : > { %p6454_p4 = pnand %p6453_p2, %p6447_p10 }
  0x74   : > { %6457 = shalt.err (!%p6454_p4)
}
  0x75   : > { %6005 = dma.hbm_to_vmem [thread:$0]  (!%p6702_p13), %s6810_s12, 20736, %s6812_s3, %s254_s20, %s6596_s30, %s6596_s30, %s6597_s21  }
  0x76   : > { %s6458_s19 = scalar_lea.hbm %s6804_s13, 32  ;;  %s6463_s26 = scalar_lea.hbm %s8044_s4, 64 }
  0x77   : > { %p6459_p0 = scmp.ne.s32.totalorder %s6804_s13, %s6458_s19  ;;  %p6464_p3 = scmp.lt.u32.totalorder %s6804_s13, %s8044_s4 }
  0x78   : > { %p6465_p6 = scmp.lt.u32.totalorder %s6463_s26, %s6458_s19  ;;  %p6467_p8 = scmp.lt.u32.totalorder %s6458_s19, %s6804_s13 }
  0x79   : > { %p6461_p5 = pnand %p6459_p0, %p6730_p1 }
  0x7a   : > { %p6466_p11 = por %p6465_p6, %p6464_p3 }
  0x7b   : > { %p6462_p9 = pneg %p6461_p5 }
  0x7c   : > { %p6468_p10 = por %p6467_p8, %p6466_p11 }
  0x7e   : > { %p6469_p7 = pnand %p6468_p10, %p6462_p9 }
  0x80   : > { %6472 = shalt.err (!%p6469_p7)
}
  0x81   : > { %s6473_s12 = scalar_lea.vmem %s6814_s24, 32  ;;  %s6599_s14 = smov [#allocation7]  }
  0x82   : > { %p6474_p12 = scmp.ne.s32.totalorder %s6814_s24, %s6473_s12  ;;  %s6478_s30 = sshll.u32 %s6599_s14, 4  ;;  %s6479_s30 = int_to_ptr.vmem [resolvable:$false] %s6478_s30 }
  0x83   : > { %s6480_s21 = scalar_lea.vmem %s6479_s30, 64  ;;  %p6481_p0 = scmp.lt.s32.totalorder %s6814_s24, %s6479_s30 }
  0x84   : > { %p6476_p2 = pnand %p6474_p12, %p6730_p1  ;;  %p6482_p5 = scmp.lt.s32.totalorder %s6480_s21, %s6473_s12 }
  0x86   : > { %p6477_p4 = pneg %p6476_p2  ;;  %p6483_p3 = por %p6482_p5, %p6481_p0 }
  0x88   : > { %p6484_p6 = pnand %p6483_p3, %p6477_p4 }
  0x8a   : > { %6487 = shalt.err (!%p6484_p6)
}
  0x8b   : > { %6011 = dma.hbm_to_vmem [thread:$0]  (!%p6702_p13), %s6804_s13, 32, %s6814_s24, %s6724_s29  }
  0x8c   : > { %s6869_s16 = scalar_lea.hbm %s8046_s6, %s6711_s18  ;;  %s345_s5 = scalar_lea.vmem [#allocation10], %s6708_s17 }
  0x8d   : > { %s353_s19 = sshll.u32 %s345_s5, 4  ;;  %s6488_s7 = scalar_lea.hbm %s6869_s16, 32  ;;  %s354_s19 = int_to_ptr.vmem [resolvable:$true] %s353_s19 }
  0x8e   : > { %p6489_p9 = scmp.ne.s32.totalorder %s6869_s16, %s6488_s7  ;;  %s6493_s29 = scalar_lea.hbm %s8046_s6, 64 }
  0x8f   : > { %p6494_p10 = scmp.lt.u32.totalorder %s6869_s16, %s8046_s6  ;;  %p6495_p7 = scmp.lt.u32.totalorder %s6493_s29, %s6488_s7 }
  0x90   : > { %p6491_p11 = pnand %p6489_p9, %p6730_p1  ;;  %p6497_p2 = scmp.lt.u32.totalorder %s6488_s7, %s6869_s16 }
  0x91   : > { %p6496_p12 = por %p6495_p7, %p6494_p10 }
  0x92   : > { %p6492_p8 = pneg %p6491_p11 }
  0x93   : > { %p6498_p4 = por %p6497_p2, %p6496_p12 }
  0x95   : > { %p6499_p0 = pnand %p6498_p4, %p6492_p8 }
  0x97   : > { %6502 = shalt.err (!%p6499_p0)
}
  0x98   : > { %s6503_s17 = scalar_lea.vmem %s354_s19, 32  ;;  %s6600_s18 = smov [#allocation10]  }
  0x99   : > { %p6504_p5 = scmp.ne.s32.totalorder %s354_s19, %s6503_s17  ;;  %s6508_s2 = sshll.u32 %s6600_s18, 4  ;;  %s6509_s2 = int_to_ptr.vmem [resolvable:$false] %s6508_s2 }
  0x9a   : > { %s6510_s22 = scalar_lea.vmem %s6509_s2, 64  ;;  %p6511_p9 = scmp.lt.s32.totalorder %s354_s19, %s6509_s2 }
  0x9b   : > { %p6506_p3 = pnand %p6504_p5, %p6730_p1  ;;  %p6512_p11 = scmp.lt.s32.totalorder %s6510_s22, %s6503_s17 }
  0x9d   : > { %p6507_p6 = pneg %p6506_p3  ;;  %p6513_p13 = por %p6512_p11, %p6511_p9 }
  0x9f   : > { %p6514_p7 = pnand %p6513_p13, %p6507_p6 }
  0xa1   : > { %6517 = shalt.err (!%p6514_p7)
}
  0xa2   : > { %p8079_p10 = scmp.ne.s32.totalorder %s8073_s15, 0  ;;  %p8080_p8 = scmp.ne.s32.totalorder %s8076_s10, 0 }
  0xa3   : > { %s6893_s9 = sand.u32 (!%p8080_p8), 1, %s6584_s25   ;;  %p8081_p13 = scmp.ne.s32.totalorder (!%p8080_p8), %s8068_s11, 0 }
  0xa4   : > { %6017 = dma.hbm_to_vmem [thread:$0]  (!%p8079_p10), %s6869_s16, 32, %s354_s19, %s6771_s23  }
  0xa5   : > { %362 = sbr.rel (%p8080_p8) target bundleno = 1846 (0x736), region = 48  ;;  %s365_s14 = scalar_lea.sflag (!%p8080_p8), [#allocation3], %s6893_s9 }
  0xa6   : > { %s5988_s12 = smul.u32 (!%p8080_p8), 1296, %s6893_s9 }
  0xa8   : > { %s6897_s30 = scalar_lea.vmem (!%p8080_p8), [#allocation2], %s5988_s12 }
  0xac   : > { %6563 = dma.done.wait (%p8081_p13), %s365_s14, 20736  }
  0xad   : > { %6565 = vsyncadd (%p8081_p13), %s365_s14, 4294946560  ;;  %s373_s15 = sand.u32 1, %s6666_s28   ;;  %s6905_s10 = sshll.u32 %s6893_s9, 1 }
  0xae   : > { %s374_s23 = scalar_lea.sflag [#allocation6], %s373_s15  ;;  %s377_s21 = scalar_lea.vmem [#allocation5], %s6905_s10 }
  0xaf   : > { %6567 = dma.done.wait (%p8081_p13), %s374_s23, 64  }
  0xb0   : > { %6569 = vsyncadd (%p8081_p13), %s374_s23, 4294967232  ;;  %s5257_s3 = sshll.u32 %s6893_s9, 8  ;;  %s386_s20 = scalar_lea.vmem [#allocation7], %s6905_s10 }
  0xb1   : > { %s392_s16 = scalar_lea.sflag [#allocation9], %s373_s15  ;;  %s6914_s5 = scalar_lea.vmem [#allocation8], %s5257_s3 }
  0xb2   : > { %6571 = dma.done.wait (%p8081_p13), %s392_s16, 4128  }
  0xb3   : > { %6573 = vsyncadd (%p8081_p13), %s392_s16, 4294963168  ;;  %v6601_v0 = vmov 0   ;;  %v6061_v1 = vld [vmem:[%s8040_s0] sm:$0xff]   ;;  %v6062_v2 = vld [vmem:[%s8040_s0 + $0x8] sm:$0xff]   ;;  %p460_p1 = scmp.lt.s32.totalorder %s6666_s28, 1  ;;  %vm2320_vm0 = vcmask 1045504  }
  0xb4   : > { %1566 = vmatprep.subr.bf16.mxu0 %v6601_v0  ;;  %v6063_v3 = vld [vmem:[%s8040_s0 + $0x10] sm:$0xff]   ;;  %v6064_v4 = vld [vmem:[%s8040_s0 + $0x18] sm:$0xff]   ;;  %v6065_v5 = vld [vmem:[%s8040_s0 + $0x20] sm:$0xff]   ;;  %s8082_s19 = sld [smem:[#allocation22_spill]]  ;;  %v6602_v60 = vmov 0.0   ;;  %vm2265_vm1 = vcmask 48128  }
  0xb5   : > { %1567 = vmatpush1.bf16.msra.mxu0 %v6061_v1  ;;  %v6079_v6 = vld [vmem:[%s6897_s30 + $0x4] ss:$8 sps:$4 sm:$0xff]   ;;  %v6077_v18 = vld [vmem:[%s6897_s30] ss:$8 sps:$4 sm:$0xff]   ;;  %v6080_v19 = vld [vmem:[%s6897_s30 + $0x14] ss:$8 sps:$4 sm:$0xff]   ;;  %2391 = vmatprep.mubr.f32.mxu1 %v6602_v60 }
  0xb6   : > { %1568 = vmatprep.subr.bf16.mxu0 %v6601_v0  ;;  %v6066_v7 = vld [vmem:[%s8040_s0 + $0x28] sm:$0xff]   ;;  %1598 = vmatprep.mubr.bf16.mxu0 %v6079_v6  ;;  %v6067_v8 = vld [vmem:[%s8040_s0 + $0x30] sm:$0xff]   ;;  %v6068_v9 = vld [vmem:[%s8040_s0 + $0x38] sm:$0xff]   ;;  %s461_s15 = scalar_select %p460_p1, %s6666_s28, 1  ;;  %vm4711_vm2 = vcmask 130048  }
  0xb7   : > { %v6069_v10 = vld [vmem:[%s8040_s0 + $0x40] sm:$0xff]   ;;  %v6070_v11 = vld [vmem:[%s8040_s0 + $0x48] sm:$0xff]   ;;  %v6071_v12 = vld [vmem:[%s8040_s0 + $0x50] sm:$0xff]   ;;  %s8084_s13 = sld [smem:[#allocation25_spill]]  ;;  %s5056_s24 = scalar_lea.sflag [#allocation4], %s6893_s9 }
  0xb8   : > { %v6072_v13 = vld [vmem:[%s8040_s0 + $0x58] sm:$0xff]   ;;  %v6073_v14 = vld [vmem:[%s8040_s0 + $0x60] sm:$0xff]   ;;  %v6074_v15 = vld [vmem:[%s8040_s0 + $0x68] sm:$0xff]   ;;  %s5989_s23 = smul.u32 144, %s461_s15 }
  0xb9   : > { %1569 = vmatpush1.bf16.msra.mxu0 %v6062_v2  ;;  %v6075_v16 = vld [vmem:[%s8040_s0 + $0x70] sm:$0xff]   ;;  %v6076_v17 = vld [vmem:[%s8040_s0 + $0x78] sm:$0xff]  }
  0xba   : > { %1570 = vmatprep.subr.bf16.mxu0 %v6601_v0  ;;  %v6082_v20 = vld [vmem:[%s6897_s30 + $0x10] ss:$8 sps:$4 sm:$0xff]   ;;  %v6083_v21 = vld [vmem:[%s6897_s30 + $0x24] ss:$8 sps:$4 sm:$0xff]   ;;  %v6085_v22 = vld [vmem:[%s6897_s30 + $0x20] ss:$8 sps:$4 sm:$0xff]   ;;  %s7014_s7 = scalar_lea.vmem %s8082_s19, %s5989_s23 }
  0xbb   : > { %v6086_v23 = vld [vmem:[%s6897_s30 + $0x34] ss:$8 sps:$4 sm:$0xff]   ;;  %v6088_v24 = vld [vmem:[%s6897_s30 + $0x30] ss:$8 sps:$4 sm:$0xff]   ;;  %v6089_v25 = vld [vmem:[%s6897_s30 + $0x44] ss:$8 sps:$4 sm:$0xff]  }
  0xbc   : > { %v6091_v26 = vld [vmem:[%s6897_s30 + $0x40] ss:$8 sps:$4 sm:$0xff]   ;;  %v6092_v27 = vld [vmem:[%s6897_s30 + $0x54] ss:$8 sps:$4 sm:$0xff]   ;;  %v6094_v28 = vld [vmem:[%s6897_s30 + $0x50] ss:$8 sps:$4 sm:$0xff]  }
  0xbd   : > { %1571 = vmatpush1.bf16.msra.mxu0 %v6063_v3  ;;  %v6095_v29 = vld [vmem:[%s6897_s30 + $0x64] ss:$8 sps:$4 sm:$0xff]   ;;  %v6097_v30 = vld [vmem:[%s6897_s30 + $0x60] ss:$8 sps:$4 sm:$0xff]   ;;  %v6098_v31 = vld [vmem:[%s6897_s30 + $0x74] ss:$8 sps:$4 sm:$0xff]  }
  0xbe   : > { %1572 = vmatprep.subr.bf16.mxu0 %v6601_v0  ;;  %v6100_v32 = vld [vmem:[%s6897_s30 + $0x70] ss:$8 sps:$4 sm:$0xff]   ;;  %v6101_v33 = vld [vmem:[%s6897_s30 + $0x84] ss:$8 sps:$4 sm:$0xff]   ;;  %v6103_v34 = vld [vmem:[%s6897_s30 + $0x80] ss:$8 sps:$4 sm:$0xff]  }
  0xbf   : > { %v6104_v35 = vld [vmem:[%s6897_s30 + $0x94] ss:$8 sps:$4 sm:$0xff]   ;;  %v6106_v36 = vld [vmem:[%s6897_s30 + $0x90] ss:$8 sps:$4 sm:$0xff]   ;;  %v6107_v37 = vld [vmem:[%s6897_s30 + $0xa4] ss:$8 sps:$4 sm:$0xff]  }
  0xc0   : > { %v6109_v38 = vld [vmem:[%s6897_s30 + $0xa0] ss:$8 sps:$4 sm:$0xff]   ;;  %v6110_v39 = vld [vmem:[%s6897_s30 + $0xb4] ss:$8 sps:$4 sm:$0xff]   ;;  %v6112_v40 = vld [vmem:[%s6897_s30 + $0xb0] ss:$8 sps:$4 sm:$0xff]  }
  0xc1   : > { %1573 = vmatpush1.bf16.msra.mxu0 %v6064_v4  ;;  %v6113_v41 = vld [vmem:[%s6897_s30 + $0xc4] ss:$8 sps:$4 sm:$0xff]   ;;  %v6115_v42 = vld [vmem:[%s6897_s30 + $0xc0] ss:$8 sps:$4 sm:$0xff]   ;;  %v6116_v43 = vld [vmem:[%s6897_s30 + $0xd4] ss:$8 sps:$4 sm:$0xff]  }
  0xc2   : > { %1574 = vmatprep.subr.bf16.mxu0 %v6601_v0  ;;  %v6118_v44 = vld [vmem:[%s6897_s30 + $0xd0] ss:$8 sps:$4 sm:$0xff]   ;;  %v6119_v45 = vld [vmem:[%s6897_s30 + $0xe4] ss:$8 sps:$4 sm:$0xff]   ;;  %v6121_v46 = vld [vmem:[%s6897_s30 + $0xe0] ss:$8 sps:$4 sm:$0xff]  }
  0xc3   : > { %v6122_v47 = vld [vmem:[%s6897_s30 + $0xf4] ss:$8 sps:$4 sm:$0xff]   ;;  %v6124_v48 = vld [vmem:[%s6897_s30 + $0xf0] ss:$8 sps:$4 sm:$0xff]   ;;  %v6125_v49 = vld [vmem:[%s6897_s30 + $0x104] ss:$8 sps:$4 sm:$0xff]  }
  0xc4   : > { %v6127_v50 = vld [vmem:[%s6897_s30 + $0x100] ss:$8 sps:$4 sm:$0xff]   ;;  %v6128_v51 = vld [vmem:[%s6897_s30 + $0x114] ss:$8 sps:$4 sm:$0xff]   ;;  %v6130_v52 = vld [vmem:[%s6897_s30 + $0x110] ss:$8 sps:$4 sm:$0xff]  }
  0xc5   : > { %1575 = vmatpush1.bf16.msra.mxu0 %v6065_v5  ;;  %v6131_v53 = vld [vmem:[%s6897_s30 + $0x124] ss:$8 sps:$4 sm:$0xff]   ;;  %v6133_v54 = vld [vmem:[%s6897_s30 + $0x120] ss:$8 sps:$4 sm:$0xff]   ;;  %v6134_v55 = vld [vmem:[%s6897_s30 + $0x134] ss:$8 sps:$4 sm:$0xff]  }
  0xc6   : > { %1576 = vmatprep.subr.bf16.mxu0 %v6601_v0  ;;  %v6136_v56 = vld [vmem:[%s6897_s30 + $0x130] ss:$8 sps:$4 sm:$0xff]   ;;  %v6137_v57 = vld [vmem:[%s6897_s30 + $0x144] ss:$8 sps:$4 sm:$0xff]   ;;  %v6139_v61 = vld [vmem:[%s6897_s30 + $0x140] ss:$8 sps:$4 sm:$0xff]  }
  0xc7   : > { %v2250_v58 = vld [vmem:[%s7014_s7 + $0x18] sm:$0x3f]  ;;  %v2249_v59 = vld [vmem:[%s7014_s7 + $0x10] sm:$0x3f]  ;;  %v2248_v63 = vld [vmem:[%s7014_s7 + $0x8] sm:$0x3f] }
  0xc8   : > { %5439 = vmatprep.subr.msk.mxu1 %vm2320_vm0, %v2250_v58  ;;  %v6140_v62 = vld [vmem:[%s6897_s30 + $0x154] ss:$8 sps:$4 sm:$0xff]   ;;  %v6143_v1 = vld [vmem:[%s6897_s30 + $0x164] ss:$8 sps:$4 sm:$0xff]   ;;  %v6145_v2 = vld [vmem:[%s6897_s30 + $0x160] ss:$8 sps:$4 sm:$0xff]  }
  0xc9   : > { %1577 = vmatpush1.bf16.msra.mxu0 %v6066_v7  ;;  %5440 = vmatpush1.msk.msra.mxu1 %vm2320_vm0, %v2249_v59  ;;  %v6146_v3 = vld [vmem:[%s6897_s30 + $0x174] ss:$8 sps:$4 sm:$0xff]   ;;  %v6148_v4 = vld [vmem:[%s6897_s30 + $0x170] ss:$8 sps:$4 sm:$0xff]   ;;  %v6149_v5 = vld [vmem:[%s6897_s30 + $0x184] ss:$8 sps:$4 sm:$0xff]  }
  0xca   : > { %1578 = vmatprep.subr.bf16.mxu0 %v6601_v0  ;;  %5459 = vmatprep.subr.msk.mxu1 %vm2320_vm0, %v2248_v63  ;;  %v6151_v6 = vld [vmem:[%s6897_s30 + $0x180] ss:$8 sps:$4 sm:$0xff]   ;;  %v6152_v7 = vld [vmem:[%s6897_s30 + $0x194] ss:$8 sps:$4 sm:$0xff]   ;;  %v6184_v63 = vld [vmem:[%s6897_s30 + $0x230] ss:$8 sps:$4 sm:$0xff]  }
  0xcb   : > { %v6182_v58 = vld [vmem:[%s6897_s30 + $0x234] ss:$8 sps:$4 sm:$0xff]  }
  0xcd   : > { %1579 = vmatpush1.bf16.msra.mxu0 %v6067_v8  ;;  %v6154_v8 = vld [vmem:[%s6897_s30 + $0x190] ss:$8 sps:$4 sm:$0xff]  }
  0xce   : > { %1580 = vmatprep.subr.bf16.mxu0 %v6601_v0 }
  0xd1   : > { %1581 = vmatpush1.bf16.msra.mxu0 %v6068_v9  ;;  %v6155_v9 = vld [vmem:[%s6897_s30 + $0x1a4] ss:$8 sps:$4 sm:$0xff]  }
  0xd2   : > { %1582 = vmatprep.subr.bf16.mxu0 %v6601_v0 }
  0xd5   : > { %1583 = vmatpush1.bf16.msra.mxu0 %v6069_v10  ;;  %v6157_v10 = vld [vmem:[%s6897_s30 + $0x1a0] ss:$8 sps:$4 sm:$0xff]  }
  0xd6   : > { %1584 = vmatprep.subr.bf16.mxu0 %v6601_v0 }
  0xd9   : > { %1585 = vmatpush1.bf16.msra.mxu0 %v6070_v11  ;;  %v6158_v11 = vld [vmem:[%s6897_s30 + $0x1b4] ss:$8 sps:$4 sm:$0xff]  }
  0xda   : > { %1586 = vmatprep.subr.bf16.mxu0 %v6601_v0 }
  0xdd   : > { %1587 = vmatpush1.bf16.msra.mxu0 %v6071_v12 }
  0xde   : > { %1588 = vmatprep.subr.bf16.mxu0 %v6601_v0 }
  0xe1   : > { %1589 = vmatpush1.bf16.msra.mxu0 %v6072_v13 }
  0xe2   : > { %1590 = vmatprep.subr.bf16.mxu0 %v6601_v0 }
  0xe5   : > { %1591 = vmatpush1.bf16.msra.mxu0 %v6073_v14  ;;  %v6160_v14 = vld [vmem:[%s6897_s30 + $0x1b0] ss:$8 sps:$4 sm:$0xff]  }
  0xe6   : > { %1592 = vmatprep.subr.bf16.mxu0 %v6601_v0 }
  0xe9   : > { %1593 = vmatpush1.bf16.msra.mxu0 %v6074_v15 }
  0xea   : > { %1594 = vmatprep.subr.bf16.mxu0 %v6601_v0 }
  0xed   : > { %1595 = vmatpush1.bf16.msra.mxu0 %v6075_v16  ;;  %v6161_v16 = vld [vmem:[%s6897_s30 + $0x1c4] ss:$8 sps:$4 sm:$0xff]  }
  0xee   : > { %1596 = vmatprep.subr.bf16.mxu0 %v6601_v0  ;;  %v6142_v0 = vld [vmem:[%s6897_s30 + $0x150] ss:$8 sps:$4 sm:$0xff]  }
  0xf1   : > { %1597 = vmatpush1.bf16.msra.mxu0 %v6076_v17 }
  0xf4   : > { %1599 = vmatmul.mubr.bf16.vlgmr.msra.gmra.mrb[0].mxu0 %v6077_v18 }
  0xf5   : > { %1606 = vmatprep.mubr.bf16.mxu0 %v6080_v19 }
  0xfc   : > { %1607 = vmatmul.mubr.bf16.gmra.mrb[4].mxu0 %v6082_v20  ;;  %v6163_v20 = vld [vmem:[%s6897_s30 + $0x1c0] ss:$8 sps:$4 sm:$0xff]  }
  0xfd   : > { %1614 = vmatprep.mubr.bf16.mxu0 %v6083_v21 }
 0x104   : > { %1615 = vmatmul.mubr.bf16.gmra.mrb[8].mxu0 %v6085_v22  ;;  %v6164_v22 = vld [vmem:[%s6897_s30 + $0x1d4] ss:$8 sps:$4 sm:$0xff]  }
 0x105   : > { %1622 = vmatprep.mubr.bf16.mxu0 %v6086_v23 }
 0x10c   : > { %1623 = vmatmul.mubr.bf16.gmra.mrb[12].mxu0 %v6088_v24 }
 0x10d   : > { %1630 = vmatprep.mubr.bf16.mxu0 %v6089_v25 }
 0x114   : > { %1631 = vmatmul.mubr.bf16.gmra.mrb[16].mxu0 %v6091_v26  ;;  %v6166_v26 = vld [vmem:[%s6897_s30 + $0x1d0] ss:$8 sps:$4 sm:$0xff]  }
 0x115   : > { %1638 = vmatprep.mubr.bf16.mxu0 %v6092_v27 }
 0x11c   : > { %1639 = vmatmul.mubr.bf16.gmra.mrb[20].mxu0 %v6094_v28  ;;  %v6167_v28 = vld [vmem:[%s6897_s30 + $0x1e4] ss:$8 sps:$4 sm:$0xff]  }
 0x11d   : > { %1646 = vmatprep.mubr.bf16.mxu0 %v6095_v29 }
 0x124   : > { %1647 = vmatmul.mubr.bf16.gmra.mrb[24].mxu0 %v6097_v30 }
 0x125   : > { %1654 = vmatprep.mubr.bf16.mxu0 %v6098_v31 }
 0x12c   : > { %1655 = vmatmul.mubr.bf16.gmra.mrb[28].mxu0 %v6100_v32  ;;  %v6169_v32 = vld [vmem:[%s6897_s30 + $0x1e0] ss:$8 sps:$4 sm:$0xff]  }
 0x12d   : > { %1662 = vmatprep.mubr.bf16.mxu0 %v6101_v33 }
 0x134   : > { %1663 = vmatmul.mubr.bf16.gmra.mrb[32].mxu0 %v6103_v34  ;;  %v6170_v34 = vld [vmem:[%s6897_s30 + $0x1f4] ss:$8 sps:$4 sm:$0xff]  }
 0x135   : > { %1670 = vmatprep.mubr.bf16.mxu0 %v6104_v35 }
 0x13c   : > { %1671 = vmatmul.mubr.bf16.gmra.mrb[36].mxu0 %v6106_v36 }
 0x13d   : > { %1678 = vmatprep.mubr.bf16.mxu0 %v6107_v37 }
 0x144   : > { %1679 = vmatmul.mubr.bf16.gmra.mrb[40].mxu0 %v6109_v38  ;;  %v6172_v38 = vld [vmem:[%s6897_s30 + $0x1f0] ss:$8 sps:$4 sm:$0xff]  }
 0x145   : > { %1686 = vmatprep.mubr.bf16.mxu0 %v6110_v39 }
 0x14c   : > { %1687 = vmatmul.mubr.bf16.gmra.mrb[44].mxu0 %v6112_v40  ;;  %v6173_v40 = vld [vmem:[%s6897_s30 + $0x204] ss:$8 sps:$4 sm:$0xff]  }
 0x14d   : > { %1694 = vmatprep.mubr.bf16.mxu0 %v6113_v41 }
 0x154   : > { %1695 = vmatmul.mubr.bf16.gmra.mrb[48].mxu0 %v6115_v42 }
 0x155   : > { %1702 = vmatprep.mubr.bf16.mxu0 %v6116_v43 }
 0x15c   : > { %1703 = vmatmul.mubr.bf16.gmra.mrb[52].mxu0 %v6118_v44  ;;  %v6175_v44 = vld [vmem:[%s6897_s30 + $0x200] ss:$8 sps:$4 sm:$0xff]  }
 0x15d   : > { %1710 = vmatprep.mubr.bf16.mxu0 %v6119_v45 }
 0x164   : > { %1711 = vmatmul.mubr.bf16.gmra.mrb[56].mxu0 %v6121_v46  ;;  %v6176_v46 = vld [vmem:[%s6897_s30 + $0x214] ss:$8 sps:$4 sm:$0xff]  }
 0x165   : > { %1718 = vmatprep.mubr.bf16.mxu0 %v6122_v47 }
 0x16c   : > { %1719 = vmatmul.mubr.bf16.gmra.mrb[60].mxu0 %v6124_v48 }
 0x16d   : > { %1726 = vmatprep.mubr.bf16.mxu0 %v6125_v49 }
 0x174   : > { %1727 = vmatmul.mubr.bf16.gmra.mrb[64].mxu0 %v6127_v50  ;;  %v6178_v50 = vld [vmem:[%s6897_s30 + $0x210] ss:$8 sps:$4 sm:$0xff]  }
 0x175   : > { %1734 = vmatprep.mubr.bf16.mxu0 %v6128_v51 }
 0x17c   : > { %1735 = vmatmul.mubr.bf16.gmra.mrb[68].mxu0 %v6130_v52  ;;  %v6179_v52 = vld [vmem:[%s6897_s30 + $0x224] ss:$8 sps:$4 sm:$0xff]  }
 0x17d   : > { %1742 = vmatprep.mubr.bf16.mxu0 %v6131_v53 }
 0x184   : > { %1743 = vmatmul.mubr.bf16.gmra.mrb[72].mxu0 %v6133_v54 }
 0x185   : > { %1750 = vmatprep.mubr.bf16.mxu0 %v6134_v55 }
 0x18c   : > { %1751 = vmatmul.mubr.bf16.gmra.mrb[76].mxu0 %v6136_v56  ;;  %v6181_v56 = vld [vmem:[%s6897_s30 + $0x220] ss:$8 sps:$4 sm:$0xff]  }
 0x18d   : > { %1758 = vmatprep.mubr.bf16.mxu0 %v6137_v57 }
 0x194   : > { %1759 = vmatmul.mubr.bf16.gmra.mrb[80].mxu0 %v6139_v61 }
 0x195   : > { %1766 = vmatprep.mubr.bf16.mxu0 %v6140_v62 }
 0x19c   : > { %1767 = vmatmul.mubr.bf16.gmra.mrb[84].mxu0 %v6142_v0 }
 0x19d   : > { %1774 = vmatprep.mubr.bf16.mxu0 %v6143_v1  ;;  %v6185_v1 = vld [vmem:[%s6897_s30 + $0x244] ss:$8 sps:$4 sm:$0xff]  }
 0x1a4   : > { %1775 = vmatmul.mubr.bf16.gmra.mrb[88].mxu0 %v6145_v2 }
 0x1a5   : > { %1782 = vmatprep.mubr.bf16.mxu0 %v6146_v3  ;;  %v2247_v3 = vld [vmem:[%s7014_s7] sm:$0x3f] }
 0x1ac   : > { %1783 = vmatmul.mubr.bf16.gmra.mrb[92].mxu0 %v6148_v4 }
 0x1ad   : > { %1790 = vmatprep.mubr.bf16.mxu0 %v6149_v5  ;;  %v2252_v5 = vld [vmem:[%s7014_s7 + $0x28] sm:$0x3f] }
 0x1b4   : > { %1791 = vmatmul.mubr.bf16.gmra.mrb[96].mxu0 %v6151_v6 }
 0x1b5   : > { %1798 = vmatprep.mubr.bf16.mxu0 %v6152_v7  ;;  %v6187_v7 = vld [vmem:[%s6897_s30 + $0x240] ss:$8 sps:$4 sm:$0xff]  }
 0x1bc   : > { %1799 = vmatmul.mubr.bf16.gmra.mrb[100].mxu0 %v6154_v8 }
 0x1bd   : > { %1806 = vmatprep.mubr.bf16.mxu0 %v6155_v9  ;;  %v6188_v9 = vld [vmem:[%s6897_s30 + $0x254] ss:$8 sps:$4 sm:$0xff]  }
 0x1c4   : > { %1807 = vmatmul.mubr.bf16.gmra.mrb[104].mxu0 %v6157_v10 }
 0x1c5   : > { %1814 = vmatprep.mubr.bf16.mxu0 %v6158_v11 }
 0x1c7   : > { %v7037_v12 = vpop.f32.mrb[0].mxu0 }
 0x1c8   : > { %v1602_v13 = vpop.f32.mrb[1].mxu0 }
 0x1c9   : > { %v7040_v15 = vpop.f32.mrb[2].mxu0 }
 0x1ca   : > { %v1605_v17 = vpop.f32.mrb[3].mxu0 }
 0x1cb   : > { %v6191_v17 = vld [vmem:[%s6897_s30 + $0x264] ss:$8 sps:$4 sm:$0xff]  }
 0x1cc   : > { %1815 = vmatmul.mubr.bf16.gmra.mrb[108].mxu0 %v6160_v14  ;;  %v6190_v14 = vld [vmem:[%s6897_s30 + $0x250] ss:$8 sps:$4 sm:$0xff]  }
 0x1cd   : > { %1822 = vmatprep.mubr.bf16.mxu0 %v6161_v16 }
 0x1cf   : > { %v7043_v18 = vpop.f32.mrb[4].mxu0 }
 0x1d0   : > { %v1610_v19 = vpop.f32.mrb[5].mxu0 }
 0x1d1   : > { %v7046_v21 = vpop.f32.mrb[6].mxu0 }
 0x1d2   : > { %v1613_v23 = vpop.f32.mrb[7].mxu0 }
 0x1d3   : > { %v6193_v23 = vld [vmem:[%s6897_s30 + $0x260] ss:$8 sps:$4 sm:$0xff]  }
 0x1d4   : > { %1823 = vmatmul.mubr.bf16.gmra.mrb[112].mxu0 %v6163_v20 }
 0x1d5   : > { %1830 = vmatprep.mubr.bf16.mxu0 %v6164_v22 }
 0x1d7   : > { %v7049_v24 = vpop.f32.mrb[8].mxu0 }
 0x1d8   : > { %v1618_v25 = vpop.f32.mrb[9].mxu0 }
 0x1d9   : > { %v7052_v27 = vpop.f32.mrb[10].mxu0 }
 0x1da   : > { %v1621_v29 = vpop.f32.mrb[11].mxu0 }
 0x1dc   : > { %1831 = vmatmul.mubr.bf16.gmra.mrb[116].mxu0 %v6166_v26  ;;  %v6194_v26 = vld [vmem:[%s6897_s30 + $0x274] ss:$8 sps:$4 sm:$0xff]  }
 0x1dd   : > { %1838 = vmatprep.mubr.bf16.mxu0 %v6167_v28 }
 0x1df   : > { %v7055_v30 = vpop.f32.mrb[12].mxu0 }
 0x1e0   : > { %v1626_v31 = vpop.f32.mrb[13].mxu0 }
 0x1e1   : > { %v7058_v33 = vpop.f32.mrb[14].mxu0 }
 0x1e2   : > { %v1629_v35 = vpop.f32.mrb[15].mxu0 }
 0x1e3   : > { %v6197_v35 = vld [vmem:[%s6897_s30 + $0x284] ss:$8 sps:$4 sm:$0xff]  }
 0x1e4   : > { %1839 = vmatmul.mubr.bf16.gmra.mrb[120].mxu0 %v6169_v32  ;;  %v6196_v32 = vld [vmem:[%s6897_s30 + $0x270] ss:$8 sps:$4 sm:$0xff]  }
 0x1e5   : > { %1846 = vmatprep.mubr.bf16.mxu0 %v6170_v34 }
 0x1e7   : > { %v7061_v36 = vpop.f32.mrb[16].mxu0 }
 0x1e8   : > { %v1634_v37 = vpop.f32.mrb[17].mxu0 }
 0x1e9   : > { %v7064_v39 = vpop.f32.mrb[18].mxu0 }
 0x1ea   : > { %v1637_v41 = vpop.f32.mrb[19].mxu0 }
 0x1eb   : > { %v6199_v41 = vld [vmem:[%s6897_s30 + $0x280] ss:$8 sps:$4 sm:$0xff]  }
 0x1ec   : > { %1847 = vmatmul.mubr.bf16.gmra.mrb[124].mxu0 %v6172_v38 }
 0x1ed   : > { %1854 = vmatprep.mubr.bf16.mxu0 %v6173_v40 }
 0x1ef   : > { %v7067_v42 = vpop.f32.mrb[20].mxu0 }
 0x1f0   : > { %v1642_v43 = vpop.f32.mrb[21].mxu0 }
 0x1f1   : > { %v7070_v45 = vpop.f32.mrb[22].mxu0 }
 0x1f2   : > { %v1645_v47 = vpop.f32.mrb[23].mxu0 }
 0x1f4   : > { %1855 = vmatmul.mubr.bf16.gmra.mrb[128].mxu0 %v6175_v44  ;;  %v6200_v44 = vld [vmem:[%s6897_s30 + $0x294] ss:$8 sps:$4 sm:$0xff]  }
 0x1f5   : > { %1862 = vmatprep.mubr.bf16.mxu0 %v6176_v46 }
 0x1f7   : > { %v7073_v48 = vpop.f32.mrb[24].mxu0 }
 0x1f8   : > { %v1650_v49 = vpop.f32.mrb[25].mxu0 }
 0x1f9   : > { %v7076_v51 = vpop.f32.mrb[26].mxu0 }
 0x1fa   : > { %v1653_v53 = vpop.f32.mrb[27].mxu0 }
 0x1fb   : > { %v6203_v53 = vld [vmem:[%s6897_s30 + $0x2a4] ss:$8 sps:$4 sm:$0xff]  }
 0x1fc   : > { %1863 = vmatmul.mubr.bf16.gmra.mrb[132].mxu0 %v6178_v50  ;;  %v6202_v50 = vld [vmem:[%s6897_s30 + $0x290] ss:$8 sps:$4 sm:$0xff]  }
 0x1fd   : > { %1870 = vmatprep.mubr.bf16.mxu0 %v6179_v52 }
 0x1ff   : > { %v7079_v54 = vpop.f32.mrb[28].mxu0 }
 0x200   : > { %v1658_v55 = vpop.f32.mrb[29].mxu0 }
 0x201   : > { %v7082_v57 = vpop.f32.mrb[30].mxu0 }
 0x202   : > { %v1661_v59 = vpop.f32.mrb[31].mxu0 }
 0x203   : > { %v6205_v59 = vld [vmem:[%s6897_s30 + $0x2a0] ss:$8 sps:$4 sm:$0xff]  }
 0x204   : > { %1871 = vmatmul.mubr.bf16.gmra.mrb[136].mxu0 %v6181_v56 }
 0x205   : > { %1878 = vmatprep.mubr.bf16.mxu0 %v6182_v58 }
 0x207   : > { %v7085_v61 = vpop.f32.mrb[32].mxu0 }
 0x208   : > { %v1666_v62 = vpop.f32.mrb[33].mxu0 }
 0x209   : > { %v7088_v0 = vpop.f32.mrb[34].mxu0 }
 0x20a   : > { %v1669_v2 = vpop.f32.mrb[35].mxu0 }
 0x20c   : > { %1879 = vmatmul.mubr.bf16.gmra.mrb[140].mxu0 %v6184_v63  ;;  %v6206_v63 = vld [vmem:[%s6897_s30 + $0x2b4] ss:$8 sps:$4 sm:$0xff]  }
 0x20d   : > { %1886 = vmatprep.mubr.bf16.mxu0 %v6185_v1 }
 0x20f   : > { %v1672_v4 = vpop.f32.mrb[36].mxu0 }
 0x210   : > { %v1674_v6 = vpop.f32.mrb[37].mxu0  ;;  %5441 = vmatmul.mubr.msk.f32.vlgmr.msra.gmra.mrb[0].mxu1 %vm2265_vm1, %v1672_v4  ;;  %v6208_v4 = vld [vmem:[%s6897_s30 + $0x2b0] ss:$8 sps:$4 sm:$0xff]  }
 0x211   : > { %v1675_v8 = vpop.f32.mrb[38].mxu0  ;;  %2397 = vmatprep.mubr.f32.mxu1 %v6602_v60  ;;  %5460 = vmatpush1.msk.msra.mxu1 %vm2320_vm0, %v2247_v3  ;;  %v6209_v6 = vld [vmem:[%s6897_s30 + $0x2c4] ss:$8 sps:$4 sm:$0xff]  }
 0x212   : > { %v1677_v10 = vpop.f32.mrb[39].mxu0  ;;  %5479 = vmatprep.subr.msk.mxu1 %vm2320_vm0, %v2252_v5 }
 0x213   : > { %v6211_v10 = vld [vmem:[%s6897_s30 + $0x2c0] ss:$8 sps:$4 sm:$0xff]  }
 0x214   : > { %5442 = vmatmul.mubr.msk.f32.gmra.mrb[2].mxu1 %vm2265_vm1, %v1675_v8  ;;  %1887 = vmatmul.mubr.bf16.gmra.mrb[144].mxu0 %v6187_v7 }
 0x215   : > { %2403 = vmatprep.mubr.f32.mxu1 %v6602_v60  ;;  %1894 = vmatprep.mubr.bf16.mxu0 %v6188_v9 }
 0x217   : > { %v1680_v11 = vpop.f32.mrb[40].mxu0 }
 0x218   : > { %v1682_v13 = vpop.f32.mrb[41].mxu0  ;;  %5443 = vmatmul.mubr.msk.f32.gmra.mrb[4].mxu1 %vm2265_vm1, %v1680_v11 }
 0x219   : > { %v1683_v16 = vpop.f32.mrb[42].mxu0  ;;  %2409 = vmatprep.mubr.f32.mxu1 %v6602_v60  ;;  %v6212_v13 = vld [vmem:[%s6897_s30 + $0x2d4] ss:$8 sps:$4 sm:$0xff]  }
 0x21a   : > { %v1685_v19 = vpop.f32.mrb[43].mxu0 }
 0x21b   : > { %v2254_v19 = vld [vmem:[%s7014_s7 + $0x38] sm:$0x3f] }
 0x21c   : > { %5444 = vmatmul.mubr.msk.f32.gmra.mrb[6].mxu1 %vm2265_vm1, %v1683_v16  ;;  %1895 = vmatmul.mubr.bf16.gmra.mrb[148].mxu0 %v6190_v14  ;;  %v2251_v16 = vld [vmem:[%s7014_s7 + $0x20] sm:$0x3f] }
 0x21d   : > { %2415 = vmatprep.mubr.f32.mxu1 %v6602_v60  ;;  %1902 = vmatprep.mubr.bf16.mxu0 %v6191_v17 }
 0x21f   : > { %v1688_v20 = vpop.f32.mrb[44].mxu0 }
 0x220   : > { %v1690_v22 = vpop.f32.mrb[45].mxu0  ;;  %5445 = vmatmul.mubr.msk.f32.gmra.mrb[8].mxu1 %vm2265_vm1, %v1688_v20 }
 0x221   : > { %v1691_v25 = vpop.f32.mrb[46].mxu0  ;;  %2421 = vmatprep.mubr.f32.mxu1 %v6602_v60  ;;  %v6214_v22 = vld [vmem:[%s6897_s30 + $0x2d0] ss:$8 sps:$4 sm:$0xff]  }
 0x222   : > { %v1693_v28 = vpop.f32.mrb[47].mxu0 }
 0x224   : > { %5446 = vmatmul.mubr.msk.f32.gmra.mrb[10].mxu1 %vm2265_vm1, %v1691_v25  ;;  %1903 = vmatmul.mubr.bf16.gmra.mrb[152].mxu0 %v6193_v23  ;;  %v6215_v25 = vld [vmem:[%s6897_s30 + $0x2e4] ss:$8 sps:$4 sm:$0xff]  }
 0x225   : > { %2427 = vmatprep.mubr.f32.mxu1 %v6602_v60  ;;  %1910 = vmatprep.mubr.bf16.mxu0 %v6194_v26 }
 0x227   : > { %v1696_v29 = vpop.f32.mrb[48].mxu0 }
 0x228   : > { %v1698_v31 = vpop.f32.mrb[49].mxu0  ;;  %5447 = vmatmul.mubr.msk.f32.gmra.mrb[12].mxu1 %vm2265_vm1, %v1696_v29  ;;  %v6217_v29 = vld [vmem:[%s6897_s30 + $0x2e0] ss:$8 sps:$4 sm:$0xff]  }
 0x229   : > { %v1699_v34 = vpop.f32.mrb[50].mxu0  ;;  %2433 = vmatprep.mubr.f32.mxu1 %v6602_v60 }
 0x22a   : > { %v1701_v37 = vpop.f32.mrb[51].mxu0 }
 0x22c   : > { %5448 = vmatmul.mubr.msk.f32.gmra.mrb[14].mxu1 %vm2265_vm1, %v1699_v34  ;;  %1911 = vmatmul.mubr.bf16.gmra.mrb[156].mxu0 %v6196_v32  ;;  %v6218_v32 = vld [vmem:[%s6897_s30 + $0x2f4] ss:$8 sps:$4 sm:$0xff]  }
 0x22d   : > { %2439 = vmatprep.mubr.f32.mxu1 %v6602_v60  ;;  %1918 = vmatprep.mubr.bf16.mxu0 %v6197_v35  ;;  %v6220_v35 = vld [vmem:[%s6897_s30 + $0x2f0] ss:$8 sps:$4 sm:$0xff]  }
 0x22f   : > { %v1704_v38 = vpop.f32.mrb[52].mxu0 }
 0x230   : > { %v1706_v40 = vpop.f32.mrb[53].mxu0  ;;  %5449 = vmatmul.mubr.msk.f32.gmra.mrb[16].mxu1 %vm2265_vm1, %v1704_v38  ;;  %v6221_v38 = vld [vmem:[%s6897_s30 + $0x304] ss:$8 sps:$4 sm:$0xff]  }
 0x231   : > { %v1707_v43 = vpop.f32.mrb[54].mxu0  ;;  %2445 = vmatprep.mubr.f32.mxu1 %v6602_v60 }
 0x232   : > { %v1709_v46 = vpop.f32.mrb[55].mxu0 }
 0x234   : > { %5450 = vmatmul.mubr.msk.f32.gmra.mrb[18].mxu1 %vm2265_vm1, %v1707_v43  ;;  %1919 = vmatmul.mubr.bf16.gmra.mrb[160].mxu0 %v6199_v41  ;;  %v6223_v41 = vld [vmem:[%s6897_s30 + $0x300] ss:$8 sps:$4 sm:$0xff]  }
 0x235   : > { %2451 = vmatprep.mubr.f32.mxu1 %v6602_v60  ;;  %1926 = vmatprep.mubr.bf16.mxu0 %v6200_v44  ;;  %v6224_v44 = vld [vmem:[%s6897_s30 + $0x314] ss:$8 sps:$4 sm:$0xff]  }
 0x237   : > { %v1712_v47 = vpop.f32.mrb[56].mxu0 }
 0x238   : > { %v1714_v49 = vpop.f32.mrb[57].mxu0  ;;  %5451 = vmatmul.mubr.msk.f32.gmra.mrb[20].mxu1 %vm2265_vm1, %v1712_v47  ;;  %v6226_v47 = vld [vmem:[%s6897_s30 + $0x310] ss:$8 sps:$4 sm:$0xff]  }
 0x239   : > { %v1715_v52 = vpop.f32.mrb[58].mxu0  ;;  %2457 = vmatprep.mubr.f32.mxu1 %v6602_v60 }
 0x23a   : > { %v1717_v55 = vpop.f32.mrb[59].mxu0 }
 0x23c   : > { %5452 = vmatmul.mubr.msk.f32.gmra.mrb[22].mxu1 %vm2265_vm1, %v1715_v52  ;;  %1927 = vmatmul.mubr.bf16.gmra.mrb[164].mxu0 %v6202_v50  ;;  %v6227_v50 = vld [vmem:[%s6897_s30 + $0x324] ss:$8 sps:$4 sm:$0xff]  }
 0x23d   : > { %2463 = vmatprep.mubr.f32.mxu1 %v6602_v60  ;;  %1934 = vmatprep.mubr.bf16.mxu0 %v6203_v53  ;;  %v6229_v53 = vld [vmem:[%s6897_s30 + $0x320] ss:$8 sps:$4 sm:$0xff]  }
 0x23f   : > { %v1720_v56 = vpop.f32.mrb[60].mxu0 }
 0x240   : > { %v1722_v58 = vpop.f32.mrb[61].mxu0  ;;  %5453 = vmatmul.mubr.msk.f32.gmra.mrb[24].mxu1 %vm2265_vm1, %v1720_v56  ;;  %v6230_v56 = vld [vmem:[%s6897_s30 + $0x334] ss:$8 sps:$4 sm:$0xff]  }
 0x241   : > { %v1723_v62 = vpop.f32.mrb[62].mxu0  ;;  %2469 = vmatprep.mubr.f32.mxu1 %v6602_v60 }
 0x242   : > { %v1725_v1 = vpop.f32.mrb[63].mxu0 }
 0x244   : > { %5454 = vmatmul.mubr.msk.f32.gmra.mrb[26].mxu1 %vm2265_vm1, %v1723_v62  ;;  %1935 = vmatmul.mubr.bf16.gmra.mrb[168].mxu0 %v6205_v59  ;;  %v6232_v59 = vld [vmem:[%s6897_s30 + $0x330] ss:$8 sps:$4 sm:$0xff]  }
 0x245   : > { %2475 = vmatprep.mubr.f32.mxu1 %v6602_v60  ;;  %1942 = vmatprep.mubr.bf16.mxu0 %v6206_v63  ;;  %v6233_v63 = vld [vmem:[%s6897_s30 + $0x344] ss:$8 sps:$4 sm:$0xff]  }
 0x247   : > { %v1728_v2 = vpop.f32.mrb[64].mxu0 }
 0x248   : > { %v1730_v3 = vpop.f32.mrb[65].mxu0  ;;  %5455 = vmatmul.mubr.msk.f32.gmra.mrb[28].mxu1 %vm2265_vm1, %v1728_v2  ;;  %v6235_v2 = vld [vmem:[%s6897_s30 + $0x340] ss:$8 sps:$4 sm:$0xff]  }
 0x249   : > { %v1731_v5 = vpop.f32.mrb[66].mxu0  ;;  %2481 = vmatprep.mubr.f32.mxu1 %v6602_v60 }
 0x24a   : > { %v1733_v7 = vpop.f32.mrb[67].mxu0 }
 0x24c   : > { %5456 = vmatmul.mubr.msk.f32.gmra.mrb[30].mxu1 %vm2265_vm1, %v1731_v5  ;;  %1943 = vmatmul.mubr.bf16.gmra.mrb[172].mxu0 %v6208_v4  ;;  %v6236_v4 = vld [vmem:[%s6897_s30 + $0x354] ss:$8 sps:$4 sm:$0xff]  }
 0x24d   : > { %2487 = vmatprep.mubr.f32.mxu1 %v6602_v60  ;;  %1950 = vmatprep.mubr.bf16.mxu0 %v6209_v6  ;;  %v6238_v6 = vld [vmem:[%s6897_s30 + $0x350] ss:$8 sps:$4 sm:$0xff]  }
 0x24f   : > { %v1736_v8 = vpop.f32.mrb[68].mxu0 }
 0x250   : > { %v1738_v9 = vpop.f32.mrb[69].mxu0  ;;  %5457 = vmatmul.mubr.msk.f32.gmra.mrb[32].mxu1 %vm2265_vm1, %v1736_v8 }
 0x251   : > { %v1739_v11 = vpop.f32.mrb[70].mxu0  ;;  %2493 = vmatprep.mubr.f32.mxu1 %v6602_v60  ;;  %v2253_v9 = vld [vmem:[%s7014_s7 + $0x30] sm:$0x3f] }
 0x252   : > { %v1741_v14 = vpop.f32.mrb[71].mxu0 }
 0x253   : > { %v6242_v14 = vld [vmem:[%s6897_s30 + $0x374] ss:$8 sps:$4 sm:$0xff]  }
 0x254   : > { %5458 = vmatmul.mubr.msk.f32.gmra.mrb[34].mxu1 %vm2265_vm1, %v1739_v11  ;;  %1951 = vmatmul.mubr.bf16.gmra.mrb[176].mxu0 %v6211_v10 }
 0x255   : > { %2624 = vmatprep.mubr.f32.mxu1 %v6602_v60  ;;  %1958 = vmatprep.mubr.bf16.mxu0 %v6212_v13  ;;  %v6241_v13 = vld [vmem:[%s6897_s30 + $0x360] ss:$8 sps:$4 sm:$0xff]  }
 0x257   : > { %v7150_v17 = vpop.f32.mrb[72].mxu0 }
 0x258   : > { %5461 = vmatmul.mubr.msk.f32.vlgmr.msra.gmra.mrb[0].mxu1 %vm2265_vm1, %v7037_v12  ;;  %v1746_v20 = vpop.f32.mrb[73].mxu0 }
 0x259   : > { %2630 = vmatprep.mubr.f32.mxu1 %v6602_v60  ;;  %5480 = vmatpush1.msk.msra.mxu1 %vm2320_vm0, %v2251_v16  ;;  %v7158_v23 = vpop.f32.mrb[74].mxu0  ;;  %v6244_v20 = vld [vmem:[%s6897_s30 + $0x370] ss:$8 sps:$4 sm:$0xff]  }
 0x25a   : > { %v1749_v26 = vpop.f32.mrb[75].mxu0  ;;  %5499 = vmatprep.subr.msk.mxu1 %vm2320_vm0, %v2254_v19 }
 0x25c   : > { %5462 = vmatmul.mubr.msk.f32.gmra.mrb[2].mxu1 %vm2265_vm1, %v7040_v15  ;;  %1959 = vmatmul.mubr.bf16.gmra.mrb[180].mxu0 %v6214_v22 }
 0x25d   : > { %2636 = vmatprep.mubr.f32.mxu1 %v6602_v60  ;;  %1966 = vmatprep.mubr.bf16.mxu0 %v6215_v25  ;;  %v6245_v25 = vld [vmem:[%s6897_s30 + $0x384] ss:$8 sps:$4 sm:$0xff]  }
 0x25f   : > { %v7165_v12 = vpop.f32.mrb[76].mxu0 }
 0x260   : > { %5463 = vmatmul.mubr.msk.f32.gmra.mrb[4].mxu1 %vm2265_vm1, %v7043_v18  ;;  %v1754_v28 = vpop.f32.mrb[77].mxu0 }
 0x261   : > { %2642 = vmatprep.mubr.f32.mxu1 %v6602_v60  ;;  %v7171_v31 = vpop.f32.mrb[78].mxu0  ;;  %v6247_v28 = vld [vmem:[%s6897_s30 + $0x380] ss:$8 sps:$4 sm:$0xff]  }
 0x262   : > { %v1757_v34 = vpop.f32.mrb[79].mxu0 }
 0x264   : > { %5464 = vmatmul.mubr.msk.f32.gmra.mrb[6].mxu1 %vm2265_vm1, %v7046_v21  ;;  %1967 = vmatmul.mubr.bf16.gmra.mrb[184].mxu0 %v6217_v29 }
 0x265   : > { %2648 = vmatprep.mubr.f32.mxu1 %v6602_v60  ;;  %1974 = vmatprep.mubr.bf16.mxu0 %v6218_v32  ;;  %v6248_v32 = vld [vmem:[%s6897_s30 + $0x394] ss:$8 sps:$4 sm:$0xff]  }
 0x267   : > { %v7177_v15 = vpop.f32.mrb[80].mxu0 }
 0x268   : > { %5465 = vmatmul.mubr.msk.f32.gmra.mrb[8].mxu1 %vm2265_vm1, %v7049_v24  ;;  %v1762_v18 = vpop.f32.mrb[81].mxu0 }
 0x269   : > { %2654 = vmatprep.mubr.f32.mxu1 %v6602_v60  ;;  %v7183_v37 = vpop.f32.mrb[82].mxu0  ;;  %v6250_v18 = vld [vmem:[%s6897_s30 + $0x390] ss:$8 sps:$4 sm:$0xff]  }
 0x26a   : > { %v1765_v40 = vpop.f32.mrb[83].mxu0 }
 0x26c   : > { %5466 = vmatmul.mubr.msk.f32.gmra.mrb[10].mxu1 %vm2265_vm1, %v7052_v27  ;;  %1975 = vmatmul.mubr.bf16.gmra.mrb[188].mxu0 %v6220_v35 }
 0x26d   : > { %2660 = vmatprep.mubr.f32.mxu1 %v6602_v60  ;;  %1982 = vmatprep.mubr.bf16.mxu0 %v6221_v38  ;;  %v6251_v38 = vld [vmem:[%s6897_s30 + $0x3a4] ss:$8 sps:$4 sm:$0xff]  }
 0x26f   : > { %v7189_v21 = vpop.f32.mrb[84].mxu0 }
 0x270   : > { %5467 = vmatmul.mubr.msk.f32.gmra.mrb[12].mxu1 %vm2265_vm1, %v7055_v30  ;;  %v1770_v24 = vpop.f32.mrb[85].mxu0 }
 0x271   : > { %2666 = vmatprep.mubr.f32.mxu1 %v6602_v60  ;;  %v7195_v43 = vpop.f32.mrb[86].mxu0  ;;  %v6253_v24 = vld [vmem:[%s6897_s30 + $0x3a0] ss:$8 sps:$4 sm:$0xff]  }
 0x272   : > { %v1773_v46 = vpop.f32.mrb[87].mxu0 }
 0x274   : > { %5468 = vmatmul.mubr.msk.f32.gmra.mrb[14].mxu1 %vm2265_vm1, %v7058_v33  ;;  %1983 = vmatmul.mubr.bf16.gmra.mrb[192].mxu0 %v6223_v41 }
 0x275   : > { %2672 = vmatprep.mubr.f32.mxu1 %v6602_v60  ;;  %1990 = vmatprep.mubr.bf16.mxu0 %v6224_v44  ;;  %v6254_v44 = vld [vmem:[%s6897_s30 + $0x3b4] ss:$8 sps:$4 sm:$0xff]  }
 0x277   : > { %v7201_v27 = vpop.f32.mrb[88].mxu0 }
 0x278   : > { %5469 = vmatmul.mubr.msk.f32.gmra.mrb[16].mxu1 %vm2265_vm1, %v7061_v36  ;;  %v1778_v30 = vpop.f32.mrb[89].mxu0 }
 0x279   : > { %2678 = vmatprep.mubr.f32.mxu1 %v6602_v60  ;;  %v7207_v49 = vpop.f32.mrb[90].mxu0  ;;  %v6256_v30 = vld [vmem:[%s6897_s30 + $0x3b0] ss:$8 sps:$4 sm:$0xff]  }
 0x27a   : > { %v1781_v52 = vpop.f32.mrb[91].mxu0 }
 0x27c   : > { %5470 = vmatmul.mubr.msk.f32.gmra.mrb[18].mxu1 %vm2265_vm1, %v7064_v39  ;;  %1991 = vmatmul.mubr.bf16.gmra.mrb[196].mxu0 %v6226_v47 }
 0x27d   : > { %2684 = vmatprep.mubr.f32.mxu1 %v6602_v60  ;;  %1998 = vmatprep.mubr.bf16.mxu0 %v6227_v50  ;;  %v6257_v50 = vld [vmem:[%s6897_s30 + $0x3c4] ss:$8 sps:$4 sm:$0xff]  }
 0x27f   : > { %v7213_v33 = vpop.f32.mrb[92].mxu0 }
 0x280   : > { %5471 = vmatmul.mubr.msk.f32.gmra.mrb[20].mxu1 %vm2265_vm1, %v7067_v42  ;;  %v1786_v36 = vpop.f32.mrb[93].mxu0 }
 0x281   : > { %2690 = vmatprep.mubr.f32.mxu1 %v6602_v60  ;;  %v7219_v55 = vpop.f32.mrb[94].mxu0  ;;  %v6259_v36 = vld [vmem:[%s6897_s30 + $0x3c0] ss:$8 sps:$4 sm:$0xff]  }
 0x282   : > { %v1789_v58 = vpop.f32.mrb[95].mxu0 }
 0x284   : > { %5472 = vmatmul.mubr.msk.f32.gmra.mrb[22].mxu1 %vm2265_vm1, %v7070_v45  ;;  %1999 = vmatmul.mubr.bf16.gmra.mrb[200].mxu0 %v6229_v53 }
 0x285   : > { %2696 = vmatprep.mubr.f32.mxu1 %v6602_v60  ;;  %2006 = vmatprep.mubr.bf16.mxu0 %v6230_v56  ;;  %v6260_v56 = vld [vmem:[%s6897_s30 + $0x3d4] ss:$8 sps:$4 sm:$0xff]  }
 0x287   : > { %v7225_v39 = vpop.f32.mrb[96].mxu0 }
 0x288   : > { %5473 = vmatmul.mubr.msk.f32.gmra.mrb[24].mxu1 %vm2265_vm1, %v7073_v48  ;;  %v1794_v42 = vpop.f32.mrb[97].mxu0 }
 0x289   : > { %2702 = vmatprep.mubr.f32.mxu1 %v6602_v60  ;;  %v7231_v62 = vpop.f32.mrb[98].mxu0  ;;  %v6262_v42 = vld [vmem:[%s6897_s30 + $0x3d0] ss:$8 sps:$4 sm:$0xff]  }
 0x28a   : > { %v1797_v1 = vpop.f32.mrb[99].mxu0 }
 0x28c   : > { %5474 = vmatmul.mubr.msk.f32.gmra.mrb[26].mxu1 %vm2265_vm1, %v7076_v51  ;;  %2007 = vmatmul.mubr.bf16.gmra.mrb[204].mxu0 %v6232_v59 }
 0x28d   : > { %2708 = vmatprep.mubr.f32.mxu1 %v6602_v60  ;;  %2014 = vmatprep.mubr.bf16.mxu0 %v6233_v63  ;;  %v6263_v63 = vld [vmem:[%s6897_s30 + $0x3e4] ss:$8 sps:$4 sm:$0xff]  }
 0x28f   : > { %v7237_v45 = vpop.f32.mrb[100].mxu0 }
 0x290   : > { %5475 = vmatmul.mubr.msk.f32.gmra.mrb[28].mxu1 %vm2265_vm1, %v7079_v54  ;;  %v1802_v48 = vpop.f32.mrb[101].mxu0 }
 0x291   : > { %2714 = vmatprep.mubr.f32.mxu1 %v6602_v60  ;;  %v7243_v3 = vpop.f32.mrb[102].mxu0  ;;  %v6265_v48 = vld [vmem:[%s6897_s30 + $0x3e0] ss:$8 sps:$4 sm:$0xff]  }
 0x292   : > { %v1805_v5 = vpop.f32.mrb[103].mxu0 }
 0x293   : > { %v2255_v5 = vld [vmem:[%s7014_s7 + $0x40] sm:$0x3f] }
 0x294   : > { %5476 = vmatmul.mubr.msk.f32.gmra.mrb[30].mxu1 %vm2265_vm1, %v7082_v57  ;;  %2015 = vmatmul.mubr.bf16.gmra.mrb[208].mxu0 %v6235_v2  ;;  %v6239_v57 = vld [vmem:[%s6897_s30 + $0x364] ss:$8 sps:$4 sm:$0xff]  }
 0x295   : > { %2720 = vmatprep.mubr.f32.mxu1 %v6602_v60  ;;  %2022 = vmatprep.mubr.bf16.mxu0 %v6236_v4 }
 0x297   : > { %v7249_v51 = vpop.f32.mrb[104].mxu0 }
 0x298   : > { %5477 = vmatmul.mubr.msk.f32.gmra.mrb[32].mxu1 %vm2265_vm1, %v7085_v61  ;;  %v1810_v54 = vpop.f32.mrb[105].mxu0  ;;  %v2256_v61 = vld [vmem:[%s7014_s7 + $0x48] sm:$0x3f] }
 0x299   : > { %2726 = vmatprep.mubr.f32.mxu1 %v6602_v60  ;;  %v7255_v7 = vpop.f32.mrb[106].mxu0 }
 0x29a   : > { %v1813_v8 = vpop.f32.mrb[107].mxu0 }
 0x29b   : > { %v6271_v8 = vld [vmem:[%s6897_s30 + $0x404] ss:$8 sps:$4 sm:$0xff]  }
 0x29c   : > { %5478 = vmatmul.mubr.msk.f32.gmra.mrb[34].mxu1 %vm2265_vm1, %v7088_v0  ;;  %2023 = vmatmul.mubr.bf16.gmra.mrb[212].mxu0 %v6238_v6 }
 0x29d   : > { %2857 = vmatprep.mubr.f32.mxu1 %v6602_v60  ;;  %2030 = vmatprep.mubr.bf16.mxu0 %v6239_v57  ;;  %v6268_v57 = vld [vmem:[%s6897_s30 + $0x3f0] ss:$8 sps:$4 sm:$0xff]  }
 0x29f   : > { %v7262_v10 = vpop.f32.mrb[108].mxu0 }
 0x2a0   : > { %5481 = vmatmul.mubr.msk.f32.vlgmr.msra.gmra.mrb[0].mxu1 %vm2265_vm1, %v7150_v17  ;;  %v1818_v11 = vpop.f32.mrb[109].mxu0 }
 0x2a1   : > { %2863 = vmatprep.mubr.f32.mxu1 %v6602_v60  ;;  %5500 = vmatpush1.msk.msra.mxu1 %vm2320_vm0, %v2253_v9  ;;  %v7270_v0 = vpop.f32.mrb[110].mxu0  ;;  %v6269_v11 = vld [vmem:[%s6897_s30 + $0x400] ss:$8 sps:$4 sm:$0xff]  }
 0x2a2   : > { %v1821_v16 = vpop.f32.mrb[111].mxu0  ;;  %5519 = vmatprep.subr.msk.mxu1 %vm2320_vm0, %v2256_v61 }
 0x2a4   : > { %5482 = vmatmul.mubr.msk.f32.gmra.mrb[2].mxu1 %vm2265_vm1, %v7158_v23  ;;  %2031 = vmatmul.mubr.bf16.gmra.mrb[216].mxu0 %v6241_v13 }
 0x2a5   : > { %2869 = vmatprep.mubr.f32.mxu1 %v6602_v60  ;;  %2038 = vmatprep.mubr.bf16.mxu0 %v6242_v14  ;;  %v6274_v14 = vld [vmem:[%s6897_s30 + $0x414] ss:$8 sps:$4 sm:$0xff]  }
 0x2a7   : > { %v7277_v17 = vpop.f32.mrb[112].mxu0 }
 0x2a8   : > { %5483 = vmatmul.mubr.msk.f32.gmra.mrb[4].mxu1 %vm2265_vm1, %v7165_v12  ;;  %v1826_v19 = vpop.f32.mrb[113].mxu0 }
 0x2a9   : > { %2875 = vmatprep.mubr.f32.mxu1 %v6602_v60  ;;  %v7283_v22 = vpop.f32.mrb[114].mxu0  ;;  %v6272_v19 = vld [vmem:[%s6897_s30 + $0x410] ss:$8 sps:$4 sm:$0xff]  }
 0x2aa   : > { %v1829_v26 = vpop.f32.mrb[115].mxu0 }
 0x2ac   : > { %5484 = vmatmul.mubr.msk.f32.gmra.mrb[6].mxu1 %vm2265_vm1, %v7171_v31  ;;  %2039 = vmatmul.mubr.bf16.gmra.mrb[220].mxu0 %v6244_v20 }
 0x2ad   : > { %2881 = vmatprep.mubr.f32.mxu1 %v6602_v60  ;;  %2046 = vmatprep.mubr.bf16.mxu0 %v6245_v25  ;;  %v6277_v25 = vld [vmem:[%s6897_s30 + $0x424] ss:$8 sps:$4 sm:$0xff]  }
 0x2af   : > { %v7289_v23 = vpop.f32.mrb[116].mxu0 }
 0x2b0   : > { %5485 = vmatmul.mubr.msk.f32.gmra.mrb[8].mxu1 %vm2265_vm1, %v7177_v15  ;;  %v1834_v12 = vpop.f32.mrb[117].mxu0 }
 0x2b1   : > { %2887 = vmatprep.mubr.f32.mxu1 %v6602_v60  ;;  %v7295_v29 = vpop.f32.mrb[118].mxu0  ;;  %v6275_v12 = vld [vmem:[%s6897_s30 + $0x420] ss:$8 sps:$4 sm:$0xff]  }
 0x2b2   : > { %v1837_v34 = vpop.f32.mrb[119].mxu0 }
 0x2b4   : > { %5486 = vmatmul.mubr.msk.f32.gmra.mrb[10].mxu1 %vm2265_vm1, %v7183_v37  ;;  %2047 = vmatmul.mubr.bf16.gmra.mrb[224].mxu0 %v6247_v28 }
 0x2b5   : > { %2893 = vmatprep.mubr.f32.mxu1 %v6602_v60  ;;  %2054 = vmatprep.mubr.bf16.mxu0 %v6248_v32  ;;  %v6280_v32 = vld [vmem:[%s6897_s30 + $0x434] ss:$8 sps:$4 sm:$0xff]  }
 0x2b7   : > { %v7301_v31 = vpop.f32.mrb[120].mxu0 }
 0x2b8   : > { %5487 = vmatmul.mubr.msk.f32.gmra.mrb[12].mxu1 %vm2265_vm1, %v7189_v21  ;;  %v1842_v15 = vpop.f32.mrb[121].mxu0 }
 0x2b9   : > { %2899 = vmatprep.mubr.f32.mxu1 %v6602_v60  ;;  %v7307_v35 = vpop.f32.mrb[122].mxu0  ;;  %v6278_v15 = vld [vmem:[%s6897_s30 + $0x430] ss:$8 sps:$4 sm:$0xff]  }
 0x2ba   : > { %v1845_v40 = vpop.f32.mrb[123].mxu0 }
 0x2bc   : > { %5488 = vmatmul.mubr.msk.f32.gmra.mrb[14].mxu1 %vm2265_vm1, %v7195_v43  ;;  %2055 = vmatmul.mubr.bf16.gmra.mrb[228].mxu0 %v6250_v18 }
 0x2bd   : > { %2905 = vmatprep.mubr.f32.mxu1 %v6602_v60  ;;  %2062 = vmatprep.mubr.bf16.mxu0 %v6251_v38  ;;  %v6283_v38 = vld [vmem:[%s6897_s30 + $0x444] ss:$8 sps:$4 sm:$0xff]  }
 0x2bf   : > { %v7313_v37 = vpop.f32.mrb[124].mxu0 }
 0x2c0   : > { %5489 = vmatmul.mubr.msk.f32.gmra.mrb[16].mxu1 %vm2265_vm1, %v7201_v27  ;;  %v1850_v21 = vpop.f32.mrb[125].mxu0 }
 0x2c1   : > { %2911 = vmatprep.mubr.f32.mxu1 %v6602_v60  ;;  %v7319_v41 = vpop.f32.mrb[126].mxu0  ;;  %v6281_v21 = vld [vmem:[%s6897_s30 + $0x440] ss:$8 sps:$4 sm:$0xff]  }
 0x2c2   : > { %v1853_v46 = vpop.f32.mrb[127].mxu0 }
 0x2c4   : > { %5490 = vmatmul.mubr.msk.f32.gmra.mrb[18].mxu1 %vm2265_vm1, %v7207_v49  ;;  %2063 = vmatmul.mubr.bf16.gmra.mrb[232].mxu0 %v6253_v24 }
 0x2c5   : > { %2917 = vmatprep.mubr.f32.mxu1 %v6602_v60  ;;  %2070 = vmatprep.mubr.bf16.mxu0 %v6254_v44  ;;  %v6286_v44 = vld [vmem:[%s6897_s30 + $0x454] ss:$8 sps:$4 sm:$0xff]  }
 0x2c7   : > { %v7325_v43 = vpop.f32.mrb[128].mxu0 }
 0x2c8   : > { %5491 = vmatmul.mubr.msk.f32.gmra.mrb[20].mxu1 %vm2265_vm1, %v7213_v33  ;;  %v1858_v27 = vpop.f32.mrb[129].mxu0 }
 0x2c9   : > { %2923 = vmatprep.mubr.f32.mxu1 %v6602_v60  ;;  %v7331_v47 = vpop.f32.mrb[130].mxu0  ;;  %v6284_v27 = vld [vmem:[%s6897_s30 + $0x450] ss:$8 sps:$4 sm:$0xff]  }
 0x2ca   : > { %v1861_v52 = vpop.f32.mrb[131].mxu0 }
 0x2cc   : > { %5492 = vmatmul.mubr.msk.f32.gmra.mrb[22].mxu1 %vm2265_vm1, %v7219_v55  ;;  %2071 = vmatmul.mubr.bf16.gmra.mrb[236].mxu0 %v6256_v30 }
 0x2cd   : > { %2929 = vmatprep.mubr.f32.mxu1 %v6602_v60  ;;  %2078 = vmatprep.mubr.bf16.mxu0 %v6257_v50  ;;  %v6289_v50 = vld [vmem:[%s6897_s30 + $0x464] ss:$8 sps:$4 sm:$0xff]  }
 0x2cf   : > { %v7337_v49 = vpop.f32.mrb[132].mxu0 }
 0x2d0   : > { %5493 = vmatmul.mubr.msk.f32.gmra.mrb[24].mxu1 %vm2265_vm1, %v7225_v39  ;;  %v1866_v33 = vpop.f32.mrb[133].mxu0 }
 0x2d1   : > { %2935 = vmatprep.mubr.f32.mxu1 %v6602_v60  ;;  %v7343_v53 = vpop.f32.mrb[134].mxu0  ;;  %v6287_v33 = vld [vmem:[%s6897_s30 + $0x460] ss:$8 sps:$4 sm:$0xff]  }
 0x2d2   : > { %v1869_v58 = vpop.f32.mrb[135].mxu0 }
 0x2d4   : > { %5494 = vmatmul.mubr.msk.f32.gmra.mrb[26].mxu1 %vm2265_vm1, %v7231_v62  ;;  %2079 = vmatmul.mubr.bf16.gmra.mrb[240].mxu0 %v6259_v36 }
 0x2d5   : > { %2941 = vmatprep.mubr.f32.mxu1 %v6602_v60  ;;  %2086 = vmatprep.mubr.bf16.mxu0 %v6260_v56  ;;  %v6292_v56 = vld [vmem:[%s6897_s30 + $0x474] ss:$8 sps:$4 sm:$0xff]  }
 0x2d7   : > { %v7349_v55 = vpop.f32.mrb[136].mxu0 }
 0x2d8   : > { %5495 = vmatmul.mubr.msk.f32.gmra.mrb[28].mxu1 %vm2265_vm1, %v7237_v45  ;;  %v1874_v39 = vpop.f32.mrb[137].mxu0 }
 0x2d9   : > { %2947 = vmatprep.mubr.f32.mxu1 %v6602_v60  ;;  %v7355_v59 = vpop.f32.mrb[138].mxu0  ;;  %v6290_v39 = vld [vmem:[%s6897_s30 + $0x470] ss:$8 sps:$4 sm:$0xff]  }
 0x2da   : > { %v1877_v1 = vpop.f32.mrb[139].mxu0 }
 0x2db   : > { %v2257_v1 = vld [vmem:[%s7014_s7 + $0x50] sm:$0x3f] }
 0x2dc   : > { %5496 = vmatmul.mubr.msk.f32.gmra.mrb[30].mxu1 %vm2265_vm1, %v7243_v3  ;;  %2087 = vmatmul.mubr.bf16.gmra.mrb[244].mxu0 %v6262_v42  ;;  %v6266_v3 = vld [vmem:[%s6897_s30 + $0x3f4] ss:$8 sps:$4 sm:$0xff]  }
 0x2dd   : > { %2953 = vmatprep.mubr.f32.mxu1 %v6602_v60  ;;  %2094 = vmatprep.mubr.bf16.mxu0 %v6263_v63 }
 0x2df   : > { %v7361_v62 = vpop.f32.mrb[140].mxu0 }
 0x2e0   : > { %5497 = vmatmul.mubr.msk.f32.gmra.mrb[32].mxu1 %vm2265_vm1, %v7249_v51  ;;  %v1882_v45 = vpop.f32.mrb[141].mxu0  ;;  %v2258_v51 = vld [vmem:[%s7014_s7 + $0x58] sm:$0x3f] }
 0x2e1   : > { %2959 = vmatprep.mubr.f32.mxu1 %v6602_v60  ;;  %v7367_v2 = vpop.f32.mrb[142].mxu0 }
 0x2e2   : > { %v1885_v4 = vpop.f32.mrb[143].mxu0 }
 0x2e3   : > { %v6298_v4 = vld [vmem:[%s6897_s30 + $0x494] ss:$8 sps:$4 sm:$0xff]  }
 0x2e4   : > { %5498 = vmatmul.mubr.msk.f32.gmra.mrb[34].mxu1 %vm2265_vm1, %v7255_v7  ;;  %2095 = vmatmul.mubr.bf16.gmra.mrb[248].mxu0 %v6265_v48 }
 0x2e5   : > { %3126 = vmatprep.mubr.f32.mxu1 %v6602_v60  ;;  %2102 = vmatprep.mubr.bf16.mxu0 %v6266_v3  ;;  %v6293_v3 = vld [vmem:[%s6897_s30 + $0x480] ss:$8 sps:$4 sm:$0xff]  }
 0x2e7   : > { %v7374_v54 = vpop.f32.mrb[144].mxu0 }
 0x2e8   : > { %5501 = vmatmul.mubr.msk.f32.vlgmr.msra.gmra.mrb[0].mxu1 %vm2265_vm1, %v7262_v10  ;;  %v1890_v6 = vpop.f32.mrb[145].mxu0 }
 0x2e9   : > { %3132 = vmatprep.mubr.f32.mxu1 %v6602_v60  ;;  %5520 = vmatpush1.msk.msra.mxu1 %vm2320_vm0, %v2255_v5  ;;  %v7382_v7 = vpop.f32.mrb[146].mxu0  ;;  %v6296_v6 = vld [vmem:[%s6897_s30 + $0x490] ss:$8 sps:$4 sm:$0xff]  }
 0x2ea   : > { %v1893_v9 = vpop.f32.mrb[147].mxu0  ;;  %5539 = vmatprep.subr.msk.mxu1 %vm2320_vm0, %v2258_v51 }
 0x2ec   : > { %5502 = vmatmul.mubr.msk.f32.gmra.mrb[2].mxu1 %vm2265_vm1, %v7270_v0  ;;  %2103 = vmatmul.mubr.bf16.gmra.mrb[252].mxu0 %v6268_v57 }
 0x2ed   : > { %3138 = vmatprep.mubr.f32.mxu1 %v6602_v60  ;;  %2110 = vmatprep.mubr.bf16.mxu0 %v6271_v8  ;;  %v6301_v8 = vld [vmem:[%s6897_s30 + $0x4a4] ss:$8 sps:$4 sm:$0xff]  }
 0x2ef   : > { %v7389_v10 = vpop.f32.mrb[148].mxu0 }
 0x2f0   : > { %5503 = vmatmul.mubr.msk.f32.gmra.mrb[4].mxu1 %vm2265_vm1, %v7277_v17  ;;  %v1898_v61 = vpop.f32.mrb[149].mxu0 }
 0x2f1   : > { %3144 = vmatprep.mubr.f32.mxu1 %v6602_v60  ;;  %v7395_v13 = vpop.f32.mrb[150].mxu0  ;;  %v6299_v61 = vld [vmem:[%s6897_s30 + $0x4a0] ss:$8 sps:$4 sm:$0xff]  }
 0x2f2   : > { %v1901_v16 = vpop.f32.mrb[151].mxu0 }
 0x2f3   : > { %v6320_v16 = vld [vmem:[%s6914_s5] ss:$8 sps:$4 sm:$0xff]  }
 0x2f4   : > { %5504 = vmatmul.mubr.msk.f32.gmra.mrb[6].mxu1 %vm2265_vm1, %v7283_v22  ;;  %2111 = vmatmul.mubr.bf16.gmra.mrb[0].mxu0 %v6269_v11 }
 0x2f5   : > { %3150 = vmatprep.mubr.f32.mxu1 %v6602_v60  ;;  %2118 = vmatprep.mubr.bf16.mxu0 %v6274_v14  ;;  %v6304_v14 = vld [vmem:[%s6897_s30 + $0x4b4] ss:$8 sps:$4 sm:$0xff]  }
 0x2f7   : > { %v7401_v0 = vpop.f32.mrb[152].mxu0 }
 0x2f8   : > { %5505 = vmatmul.mubr.msk.f32.gmra.mrb[8].mxu1 %vm2265_vm1, %v7289_v23  ;;  %v1906_v17 = vpop.f32.mrb[153].mxu0 }
 0x2f9   : > { %3156 = vmatprep.mubr.f32.mxu1 %v6602_v60  ;;  %v7407_v20 = vpop.f32.mrb[154].mxu0  ;;  %v6322_v17 = vld [vmem:[%s6914_s5 + $0x4] ss:$8 sps:$4 sm:$0xff]  }
 0x2fa   : > { %v1909_v26 = vpop.f32.mrb[155].mxu0  ;;  %4991 = vmatprep.subr.bf16.mxu0 %v6322_v17 }
 0x2fb   : > { %4992 = vmatpush1.bf16.msra.mxu0 %v6320_v16  ;;  %v6307_v26 = vld [vmem:[%s6897_s30 + $0x4c4] ss:$8 sps:$4 sm:$0xff]  }
 0x2fc   : > { %5506 = vmatmul.mubr.msk.f32.gmra.mrb[10].mxu1 %vm2265_vm1, %v7295_v29  ;;  %2119 = vmatmul.mubr.bf16.gmra.mrb[4].mxu0 %v6272_v19 }
 0x2fd   : > { %3162 = vmatprep.mubr.f32.mxu1 %v6602_v60  ;;  %2126 = vmatprep.mubr.bf16.mxu0 %v6277_v25  ;;  %v6302_v25 = vld [vmem:[%s6897_s30 + $0x4b0] ss:$8 sps:$4 sm:$0xff]  }
 0x2ff   : > { %v7413_v22 = vpop.f32.mrb[156].mxu0 }
 0x300   : > { %5507 = vmatmul.mubr.msk.f32.gmra.mrb[12].mxu1 %vm2265_vm1, %v7301_v31  ;;  %v1914_v23 = vpop.f32.mrb[157].mxu0 }
 0x301   : > { %3168 = vmatprep.mubr.f32.mxu1 %v6602_v60  ;;  %v7419_v28 = vpop.f32.mrb[158].mxu0 }
 0x302   : > { %v1917_v34 = vpop.f32.mrb[159].mxu0 }
 0x304   : > { %5508 = vmatmul.mubr.msk.f32.gmra.mrb[14].mxu1 %vm2265_vm1, %v7307_v35  ;;  %2127 = vmatmul.mubr.bf16.gmra.mrb[8].mxu0 %v6275_v12 }
 0x305   : > { %3174 = vmatprep.mubr.f32.mxu1 %v6602_v60  ;;  %2134 = vmatprep.mubr.bf16.mxu0 %v6280_v32  ;;  %v6305_v32 = vld [vmem:[%s6897_s30 + $0x4c0] ss:$8 sps:$4 sm:$0xff]  }
 0x307   : > { %v7425_v29 = vpop.f32.mrb[160].mxu0 }
 0x308   : > { %5509 = vmatmul.mubr.msk.f32.gmra.mrb[16].mxu1 %vm2265_vm1, %v7313_v37  ;;  %v1922_v31 = vpop.f32.mrb[161].mxu0 }
 0x309   : > { %3180 = vmatprep.mubr.f32.mxu1 %v6602_v60  ;;  %v7431_v18 = vpop.f32.mrb[162].mxu0  ;;  %v6310_v31 = vld [vmem:[%s6897_s30 + $0x4d4] ss:$8 sps:$4 sm:$0xff]  }
 0x30a   : > { %v1925_v40 = vpop.f32.mrb[163].mxu0 }
 0x30c   : > { %5510 = vmatmul.mubr.msk.f32.gmra.mrb[18].mxu1 %vm2265_vm1, %v7319_v41  ;;  %2135 = vmatmul.mubr.bf16.gmra.mrb[12].mxu0 %v6278_v15 }
 0x30d   : > { %3186 = vmatprep.mubr.f32.mxu1 %v6602_v60  ;;  %2142 = vmatprep.mubr.bf16.mxu0 %v6283_v38  ;;  %v6308_v38 = vld [vmem:[%s6897_s30 + $0x4d0] ss:$8 sps:$4 sm:$0xff]  }
 0x30f   : > { %v7437_v35 = vpop.f32.mrb[164].mxu0 }
 0x310   : > { %5511 = vmatmul.mubr.msk.f32.gmra.mrb[20].mxu1 %vm2265_vm1, %v7325_v43  ;;  %v1930_v37 = vpop.f32.mrb[165].mxu0 }
 0x311   : > { %3192 = vmatprep.mubr.f32.mxu1 %v6602_v60  ;;  %v7443_v24 = vpop.f32.mrb[166].mxu0  ;;  %v6313_v37 = vld [vmem:[%s6897_s30 + $0x4e4] ss:$8 sps:$4 sm:$0xff]  }
 0x312   : > { %v1933_v46 = vpop.f32.mrb[167].mxu0 }
 0x314   : > { %5512 = vmatmul.mubr.msk.f32.gmra.mrb[22].mxu1 %vm2265_vm1, %v7331_v47  ;;  %2143 = vmatmul.mubr.bf16.gmra.mrb[16].mxu0 %v6281_v21 }
 0x315   : > { %3198 = vmatprep.mubr.f32.mxu1 %v6602_v60  ;;  %2150 = vmatprep.mubr.bf16.mxu0 %v6286_v44  ;;  %v6311_v44 = vld [vmem:[%s6897_s30 + $0x4e0] ss:$8 sps:$4 sm:$0xff]  }
 0x317   : > { %v7449_v41 = vpop.f32.mrb[168].mxu0 }
 0x318   : > { %5513 = vmatmul.mubr.msk.f32.gmra.mrb[24].mxu1 %vm2265_vm1, %v7337_v49  ;;  %v1938_v43 = vpop.f32.mrb[169].mxu0 }
 0x319   : > { %3204 = vmatprep.mubr.f32.mxu1 %v6602_v60  ;;  %v7455_v30 = vpop.f32.mrb[170].mxu0  ;;  %v6316_v43 = vld [vmem:[%s6897_s30 + $0x4f4] ss:$8 sps:$4 sm:$0xff]  }
 0x31a   : > { %v1941_v52 = vpop.f32.mrb[171].mxu0 }
 0x31c   : > { %5514 = vmatmul.mubr.msk.f32.gmra.mrb[26].mxu1 %vm2265_vm1, %v7343_v53  ;;  %2151 = vmatmul.mubr.bf16.gmra.mrb[20].mxu0 %v6284_v27 }
 0x31d   : > { %3210 = vmatprep.mubr.f32.mxu1 %v6602_v60  ;;  %2158 = vmatprep.mubr.bf16.mxu0 %v6289_v50  ;;  %v6314_v50 = vld [vmem:[%s6897_s30 + $0x4f0] ss:$8 sps:$4 sm:$0xff]  }
 0x31f   : > { %v7461_v47 = vpop.f32.mrb[172].mxu0 }
 0x320   : > { %5515 = vmatmul.mubr.msk.f32.gmra.mrb[28].mxu1 %vm2265_vm1, %v7349_v55  ;;  %v1946_v49 = vpop.f32.mrb[173].mxu0 }
 0x321   : > { %3216 = vmatprep.mubr.f32.mxu1 %v6602_v60  ;;  %v7467_v36 = vpop.f32.mrb[174].mxu0  ;;  %v6319_v49 = vld [vmem:[%s6897_s30 + $0x504] ss:$8 sps:$4 sm:$0xff]  }
 0x322   : > { %v1949_v58 = vpop.f32.mrb[175].mxu0 }
 0x323   : > { %v6323_v58 = vld [vmem:[%s6914_s5 + $0x10] ss:$8 sps:$4 sm:$0xff]  }
 0x324   : > { %5516 = vmatmul.mubr.msk.f32.gmra.mrb[30].mxu1 %vm2265_vm1, %v7355_v59  ;;  %2159 = vmatmul.mubr.bf16.gmra.mrb[24].mxu0 %v6287_v33  ;;  %v6295_v59 = vld [vmem:[%s6897_s30 + $0x484] ss:$8 sps:$4 sm:$0xff]  }
 0x325   : > { %3222 = vmatprep.mubr.f32.mxu1 %v6602_v60  ;;  %2166 = vmatprep.mubr.bf16.mxu0 %v6292_v56 }
 0x327   : > { %v7473_v53 = vpop.f32.mrb[176].mxu0 }
 0x328   : > { %5517 = vmatmul.mubr.msk.f32.gmra.mrb[32].mxu1 %vm2265_vm1, %v7361_v62  ;;  %v1954_v55 = vpop.f32.mrb[177].mxu0  ;;  %v2260_v62 = vld [vmem:[%s7014_s7 + $0x68] sm:$0x3f] }
 0x329   : > { %3228 = vmatprep.mubr.f32.mxu1 %v6602_v60  ;;  %v7479_v42 = vpop.f32.mrb[178].mxu0  ;;  %v6325_v55 = vld [vmem:[%s6914_s5 + $0x14] ss:$8 sps:$4 sm:$0xff]  }
 0x32a   : > { %v1957_v63 = vpop.f32.mrb[179].mxu0  ;;  %4993 = vmatprep.subr.bf16.mxu0 %v6325_v55 }
 0x32b   : > { %4994 = vmatpush1.bf16.msra.mxu0 %v6323_v58 }
 0x32c   : > { %5518 = vmatmul.mubr.msk.f32.gmra.mrb[34].mxu1 %vm2265_vm1, %v7367_v2  ;;  %2167 = vmatmul.mubr.bf16.gmra.mrb[28].mxu0 %v6290_v39 }
 0x32d   : > { %3395 = vmatprep.mubr.f32.mxu1 %v6602_v60  ;;  %2174 = vmatprep.mubr.bf16.mxu0 %v6295_v59  ;;  %v2259_v59 = vld [vmem:[%s7014_s7 + $0x60] sm:$0x3f] }
 0x32f   : > { %v7486_v45 = vpop.f32.mrb[180].mxu0 }
 0x330   : > { %5521 = vmatmul.mubr.msk.f32.vlgmr.msra.gmra.mrb[0].mxu1 %vm2265_vm1, %v7374_v54  ;;  %v1962_v48 = vpop.f32.mrb[181].mxu0 }
 0x331   : > { %3401 = vmatprep.mubr.f32.mxu1 %v6602_v60  ;;  %5540 = vmatpush1.msk.msra.mxu1 %vm2320_vm0, %v2257_v1  ;;  %v7494_v2 = vpop.f32.mrb[182].mxu0 }
 0x332   : > { %v1965_v5 = vpop.f32.mrb[183].mxu0  ;;  %5559 = vmatprep.subr.msk.mxu1 %vm2320_vm0, %v2260_v62 }
 0x334   : > { %5522 = vmatmul.mubr.msk.f32.gmra.mrb[2].mxu1 %vm2265_vm1, %v7382_v7  ;;  %2175 = vmatmul.mubr.bf16.gmra.mrb[32].mxu0 %v6293_v3 }
 0x335   : > { %3407 = vmatprep.mubr.f32.mxu1 %v6602_v60  ;;  %2182 = vmatprep.mubr.bf16.mxu0 %v6298_v4 }
 0x337   : > { %v7501_v54 = vpop.f32.mrb[184].mxu0 }
 0x338   : > { %5523 = vmatmul.mubr.msk.f32.gmra.mrb[4].mxu1 %vm2265_vm1, %v7389_v10  ;;  %v1970_v51 = vpop.f32.mrb[185].mxu0 }
 0x339   : > { %3413 = vmatprep.mubr.f32.mxu1 %v6602_v60  ;;  %v7507_v57 = vpop.f32.mrb[186].mxu0 }
 0x33a   : > { %v1973_v9 = vpop.f32.mrb[187].mxu0 }
 0x33c   : > { %5524 = vmatmul.mubr.msk.f32.gmra.mrb[6].mxu1 %vm2265_vm1, %v7395_v13  ;;  %2183 = vmatmul.mubr.bf16.gmra.mrb[36].mxu0 %v6296_v6 }
 0x33d   : > { %3419 = vmatprep.mubr.f32.mxu1 %v6602_v60  ;;  %2190 = vmatprep.mubr.bf16.mxu0 %v6301_v8 }
 0x33f   : > { %v7513_v7 = vpop.f32.mrb[188].mxu0 }
 0x340   : > { %5525 = vmatmul.mubr.msk.f32.gmra.mrb[8].mxu1 %vm2265_vm1, %v7401_v0  ;;  %v1978_v10 = vpop.f32.mrb[189].mxu0 }
 0x341   : > { %3425 = vmatprep.mubr.f32.mxu1 %v6602_v60  ;;  %v7519_v11 = vpop.f32.mrb[190].mxu0 }
 0x342   : > { %v1981_v13 = vpop.f32.mrb[191].mxu0 }
 0x344   : > { %5526 = vmatmul.mubr.msk.f32.gmra.mrb[10].mxu1 %vm2265_vm1, %v7407_v20  ;;  %2191 = vmatmul.mubr.bf16.gmra.mrb[40].mxu0 %v6299_v61  ;;  %v6326_v61 = vld [vmem:[%s6914_s5 + $0x20] ss:$8 sps:$4 sm:$0xff]  }
 0x345   : > { %3431 = vmatprep.mubr.f32.mxu1 %v6602_v60  ;;  %2198 = vmatprep.mubr.bf16.mxu0 %v6304_v14 }
 0x347   : > { %v7527_v0 = vpop.f32.mrb[192].mxu0 }
 0x348   : > { %5527 = vmatmul.mubr.msk.f32.gmra.mrb[12].mxu1 %vm2265_vm1, %v7413_v22  ;;  %v1986_v19 = vpop.f32.mrb[193].mxu0 }
 0x349   : > { %3437 = vmatprep.mubr.f32.mxu1 %v6602_v60  ;;  %v7533_v20 = vpop.f32.mrb[194].mxu0 }
 0x34a   : > { %v1989_v23 = vpop.f32.mrb[195].mxu0 }
 0x34c   : > { %5528 = vmatmul.mubr.msk.f32.gmra.mrb[14].mxu1 %vm2265_vm1, %v7419_v28  ;;  %2199 = vmatmul.mubr.bf16.gmra.mrb[44].mxu0 %v6302_v25 }
 0x34d   : > { %3443 = vmatprep.mubr.f32.mxu1 %v6602_v60  ;;  %2206 = vmatprep.mubr.bf16.mxu0 %v6307_v26 }
 0x34f   : > { %v7539_v12 = vpop.f32.mrb[196].mxu0 }
 0x350   : > { %5529 = vmatmul.mubr.msk.f32.gmra.mrb[16].mxu1 %vm2265_vm1, %v7425_v29  ;;  %v1994_v22 = vpop.f32.mrb[197].mxu0 }
 0x351   : > { %3449 = vmatprep.mubr.f32.mxu1 %v6602_v60  ;;  %v7545_v34 = vpop.f32.mrb[198].mxu0 }
 0x352   : > { %v1997_v15 = vpop.f32.mrb[199].mxu0 }
 0x354   : > { %5530 = vmatmul.mubr.msk.f32.gmra.mrb[18].mxu1 %vm2265_vm1, %v7431_v18  ;;  %2207 = vmatmul.mubr.bf16.gmra.mrb[48].mxu0 %v6305_v32 }
 0x355   : > { %3455 = vmatprep.mubr.f32.mxu1 %v6602_v60  ;;  %2214 = vmatprep.mubr.bf16.mxu0 %v6310_v31 }
 0x357   : > { %v7551_v28 = vpop.f32.mrb[200].mxu0 }
 0x358   : > { %5531 = vmatmul.mubr.msk.f32.gmra.mrb[20].mxu1 %vm2265_vm1, %v7437_v35  ;;  %v2002_v29 = vpop.f32.mrb[201].mxu0 }
 0x359   : > { %3461 = vmatprep.mubr.f32.mxu1 %v6602_v60  ;;  %v7557_v40 = vpop.f32.mrb[202].mxu0 }
 0x35a   : > { %v2005_v21 = vpop.f32.mrb[203].mxu0 }
 0x35c   : > { %5532 = vmatmul.mubr.msk.f32.gmra.mrb[22].mxu1 %vm2265_vm1, %v7443_v24  ;;  %2215 = vmatmul.mubr.bf16.gmra.mrb[52].mxu0 %v6308_v38  ;;  %v2261_v38 = vld [vmem:[%s7014_s7 + $0x70] sm:$0x3f] }
 0x35d   : > { %3467 = vmatprep.mubr.f32.mxu1 %v6602_v60  ;;  %2222 = vmatprep.mubr.bf16.mxu0 %v6313_v37  ;;  %v2264_v37 = vld [vmem:[%s7014_s7 + $0x88] sm:$0x3f] }
 0x35f   : > { %v7563_v18 = vpop.f32.mrb[204].mxu0 }
 0x360   : > { %5533 = vmatmul.mubr.msk.f32.gmra.mrb[24].mxu1 %vm2265_vm1, %v7449_v41  ;;  %v2010_v35 = vpop.f32.mrb[205].mxu0 }
 0x361   : > { %3473 = vmatprep.mubr.f32.mxu1 %v6602_v60  ;;  %v7569_v46 = vpop.f32.mrb[206].mxu0  ;;  %v6331_v35 = vld [vmem:[%s6914_s5 + $0x34] ss:$8 sps:$4 sm:$0xff]  }
 0x362   : > { %v2013_v27 = vpop.f32.mrb[207].mxu0 }
 0x364   : > { %5534 = vmatmul.mubr.msk.f32.gmra.mrb[26].mxu1 %vm2265_vm1, %v7455_v30  ;;  %2223 = vmatmul.mubr.bf16.gmra.mrb[56].mxu0 %v6311_v44 }
 0x365   : > { %3479 = vmatprep.mubr.f32.mxu1 %v6602_v60  ;;  %2230 = vmatprep.mubr.bf16.mxu0 %v6316_v43 }
 0x367   : > { %v7575_v24 = vpop.f32.mrb[208].mxu0 }
 0x368   : > { %5535 = vmatmul.mubr.msk.f32.gmra.mrb[28].mxu1 %vm2265_vm1, %v7461_v47  ;;  %v2018_v41 = vpop.f32.mrb[209].mxu0  ;;  %v6317_v47 = vld [vmem:[%s6897_s30 + $0x500] ss:$8 sps:$4 sm:$0xff]   ;;  %s404_s30 = scalar_lea.vmem [#allocation10], %s6905_s10 }
 0x369   : > { %3485 = vmatprep.mubr.f32.mxu1 %v6602_v60  ;;  %v7581_v52 = vpop.f32.mrb[210].mxu0 }
 0x36a   : > { %v2021_v30 = vpop.f32.mrb[211].mxu0 }
 0x36c   : > { %5536 = vmatmul.mubr.msk.f32.gmra.mrb[30].mxu1 %vm2265_vm1, %v7467_v36  ;;  %2231 = vmatmul.mubr.bf16.gmra.mrb[60].mxu0 %v6314_v50 }
 0x36d   : > { %3491 = vmatprep.mubr.f32.mxu1 %v6602_v60  ;;  %2238 = vmatprep.mubr.bf16.mxu0 %v6319_v49 }
 0x36f   : > { %v7587_v33 = vpop.f32.mrb[212].mxu0 }
 0x370   : > { %5537 = vmatmul.mubr.msk.f32.gmra.mrb[32].mxu1 %vm2265_vm1, %v7473_v53  ;;  %v2026_v56 = vpop.f32.mrb[213].mxu0  ;;  %v2262_v53 = vld [vmem:[%s7014_s7 + $0x78] sm:$0x3f] }
 0x371   : > { %3497 = vmatprep.mubr.f32.mxu1 %v6602_v60  ;;  %v7595_v39 = vpop.f32.mrb[214].mxu0 }
 0x372   : > { %v2029_v36 = vpop.f32.mrb[215].mxu0 }
 0x374   : > { %5538 = vmatmul.mubr.msk.f32.gmra.mrb[34].mxu1 %vm2265_vm1, %v7479_v42  ;;  %2239 = vmatmul.mubr.bf16.gmra.mrb[64].mxu0 %v6317_v47 }
 0x375   : > { %3664 = vmatprep.mubr.f32.mxu1 %v6602_v60 }
 0x377   : > { %v7601_v63 = vpop.f32.mrb[216].mxu0 }
 0x378   : > { %5541 = vmatmul.mubr.msk.f32.vlgmr.msra.gmra.mrb[0].mxu1 %vm2265_vm1, %v7486_v45  ;;  %v2034_v1 = vpop.f32.mrb[217].mxu0 }
 0x379   : > { %3670 = vmatprep.mubr.f32.mxu1 %v6602_v60  ;;  %5560 = vmatpush1.msk.msra.mxu1 %vm2320_vm0, %v2259_v59  ;;  %v7608_v62 = vpop.f32.mrb[218].mxu0  ;;  %v6332_v1 = vld [vmem:[%s6914_s5 + $0x40] ss:$8 sps:$4 sm:$0xff]  }
 0x37a   : > { %v2037_v48 = vpop.f32.mrb[219].mxu0  ;;  %5579 = vmatprep.subr.msk.mxu1 %vm2320_vm0, %v2262_v53 }
 0x37c   : > { %5542 = vmatmul.mubr.msk.f32.gmra.mrb[2].mxu1 %vm2265_vm1, %v7494_v2 }
 0x37d   : > { %3676 = vmatprep.mubr.f32.mxu1 %v6602_v60 }
 0x37f   : > { %v7614_v42 = vpop.f32.mrb[220].mxu0 }
 0x380   : > { %5543 = vmatmul.mubr.msk.f32.gmra.mrb[4].mxu1 %vm2265_vm1, %v7501_v54  ;;  %v2042_v45 = vpop.f32.mrb[221].mxu0 }
 0x381   : > { %3682 = vmatprep.mubr.f32.mxu1 %v6602_v60  ;;  %v7619_v3 = vpop.f32.mrb[222].mxu0 }
 0x382   : > { %v2045_v4 = vpop.f32.mrb[223].mxu0 }
 0x384   : > { %5544 = vmatmul.mubr.msk.f32.gmra.mrb[6].mxu1 %vm2265_vm1, %v7507_v57 }
 0x385   : > { %3688 = vmatprep.mubr.f32.mxu1 %v6602_v60 }
 0x387   : > { %v7624_v5 = vpop.f32.mrb[224].mxu0 }
 0x388   : > { %5545 = vmatmul.mubr.msk.f32.gmra.mrb[8].mxu1 %vm2265_vm1, %v7513_v7  ;;  %v2050_v2 = vpop.f32.mrb[225].mxu0 }
 0x389   : > { %3694 = vmatprep.mubr.f32.mxu1 %v6602_v60  ;;  %v7629_v54 = vpop.f32.mrb[226].mxu0 }
 0x38a   : > { %v2053_v51 = vpop.f32.mrb[227].mxu0 }
 0x38c   : > { %5546 = vmatmul.mubr.msk.f32.gmra.mrb[10].mxu1 %vm2265_vm1, %v7519_v11  ;;  %v6328_v11 = vld [vmem:[%s6914_s5 + $0x24] ss:$8 sps:$4 sm:$0xff]  }
 0x38d   : > { %3700 = vmatprep.mubr.f32.mxu1 %v6602_v60  ;;  %4995 = vmatprep.subr.bf16.mxu0 %v6328_v11 }
 0x38e   : > { %4996 = vmatpush1.bf16.msra.mxu0 %v6326_v61 }
 0x38f   : > { %v7634_v6 = vpop.f32.mrb[228].mxu0  ;;  %4997 = vmatprep.subr.bf16.mxu0 %v6331_v35 }
 0x390   : > { %5547 = vmatmul.mubr.msk.f32.gmra.mrb[12].mxu1 %vm2265_vm1, %v7527_v0  ;;  %v2058_v57 = vpop.f32.mrb[229].mxu0 }
 0x391   : > { %3706 = vmatprep.mubr.f32.mxu1 %v6602_v60  ;;  %v7639_v8 = vpop.f32.mrb[230].mxu0 }
 0x392   : > { %v2061_v9 = vpop.f32.mrb[231].mxu0 }
 0x394   : > { %5548 = vmatmul.mubr.msk.f32.gmra.mrb[14].mxu1 %vm2265_vm1, %v7533_v20 }
 0x395   : > { %3712 = vmatprep.mubr.f32.mxu1 %v6602_v60 }
 0x397   : > { %v7644_v7 = vpop.f32.mrb[232].mxu0 }
 0x398   : > { %5549 = vmatmul.mubr.msk.f32.gmra.mrb[16].mxu1 %vm2265_vm1, %v7539_v12  ;;  %v2066_v10 = vpop.f32.mrb[233].mxu0 }
 0x399   : > { %3718 = vmatprep.mubr.f32.mxu1 %v6602_v60  ;;  %v7651_v14 = vpop.f32.mrb[234].mxu0  ;;  %v2263_v10 = vld [vmem:[%s7014_s7 + $0x80] sm:$0x3f] }
 0x39a   : > { %v2069_v13 = vpop.f32.mrb[235].mxu0 }
 0x39c   : > { %5550 = vmatmul.mubr.msk.f32.gmra.mrb[18].mxu1 %vm2265_vm1, %v7545_v34 }
 0x39d   : > { %3724 = vmatprep.mubr.f32.mxu1 %v6602_v60 }
 0x39f   : > { %v7656_v16 = vpop.f32.mrb[236].mxu0 }
 0x3a0   : > { %5551 = vmatmul.mubr.msk.f32.gmra.mrb[20].mxu1 %vm2265_vm1, %v7551_v28  ;;  %v2074_v17 = vpop.f32.mrb[237].mxu0 }
 0x3a1   : > { %3730 = vmatprep.mubr.f32.mxu1 %v6602_v60  ;;  %v7661_v0 = vpop.f32.mrb[238].mxu0 }
 0x3a2   : > { %v2077_v19 = vpop.f32.mrb[239].mxu0 }
 0x3a3   : > { %v6337_v19 = vld [vmem:[%s6914_s5 + $0x54] ss:$8 sps:$4 sm:$0xff]  }
 0x3a4   : > { %5552 = vmatmul.mubr.msk.f32.gmra.mrb[22].mxu1 %vm2265_vm1, %v7557_v40 }
 0x3a5   : > { %3736 = vmatprep.mubr.f32.mxu1 %v6602_v60 }
 0x3a7   : > { %v7666_v25 = vpop.f32.mrb[240].mxu0 }
 0x3a8   : > { %5553 = vmatmul.mubr.msk.f32.gmra.mrb[24].mxu1 %vm2265_vm1, %v7563_v18  ;;  %v2082_v20 = vpop.f32.mrb[241].mxu0  ;;  %v6329_v18 = vld [vmem:[%s6914_s5 + $0x30] ss:$8 sps:$4 sm:$0xff]  }
 0x3a9   : > { %3742 = vmatprep.mubr.f32.mxu1 %v6602_v60  ;;  %v7671_v26 = vpop.f32.mrb[242].mxu0  ;;  %4998 = vmatpush1.bf16.msra.mxu0 %v6329_v18 }
 0x3aa   : > { %v2085_v23 = vpop.f32.mrb[243].mxu0 }
 0x3ab   : > { %v6340_v23 = vld [vmem:[%s6914_s5 + $0x64] ss:$8 sps:$4 sm:$0xff]  }
 0x3ac   : > { %5554 = vmatmul.mubr.msk.f32.gmra.mrb[26].mxu1 %vm2265_vm1, %v7569_v46 }
 0x3ad   : > { %3748 = vmatprep.mubr.f32.mxu1 %v6602_v60 }
 0x3af   : > { %v7676_v12 = vpop.f32.mrb[244].mxu0 }
 0x3b0   : > { %5555 = vmatmul.mubr.msk.f32.gmra.mrb[28].mxu1 %vm2265_vm1, %v7575_v24  ;;  %v2090_v22 = vpop.f32.mrb[245].mxu0 }
 0x3b1   : > { %3754 = vmatprep.mubr.f32.mxu1 %v6602_v60  ;;  %v7681_v32 = vpop.f32.mrb[246].mxu0 }
 0x3b2   : > { %v2093_v34 = vpop.f32.mrb[247].mxu0 }
 0x3b4   : > { %5556 = vmatmul.mubr.msk.f32.gmra.mrb[30].mxu1 %vm2265_vm1, %v7581_v52 }
 0x3b5   : > { %3760 = vmatprep.mubr.f32.mxu1 %v6602_v60 }
 0x3b7   : > { %v7686_v31 = vpop.f32.mrb[248].mxu0 }
 0x3b8   : > { %5557 = vmatmul.mubr.msk.f32.gmra.mrb[32].mxu1 %vm2265_vm1, %v7587_v33  ;;  %v2098_v15 = vpop.f32.mrb[249].mxu0 }
 0x3b9   : > { %3766 = vmatprep.mubr.f32.mxu1 %v6602_v60  ;;  %v7691_v28 = vpop.f32.mrb[250].mxu0 }
 0x3ba   : > { %v2101_v29 = vpop.f32.mrb[251].mxu0 }
 0x3bb   : > { %v6344_v29 = vld [vmem:[%s6914_s5 + $0x80] ss:$8 sps:$4 sm:$0xff]  }
 0x3bc   : > { %5558 = vmatmul.mubr.msk.f32.gmra.mrb[34].mxu1 %vm2265_vm1, %v7595_v39 }
 0x3bd   : > { %3933 = vmatprep.mubr.f32.mxu1 %v6602_v60 }
 0x3bf   : > { %v7697_v40 = vpop.f32.mrb[252].mxu0 }
 0x3c0   : > { %5561 = vmatmul.mubr.msk.f32.vlgmr.msra.gmra.mrb[0].mxu1 %vm2265_vm1, %v7601_v63  ;;  %v2106_v21 = vpop.f32.mrb[253].mxu0 }
 0x3c1   : > { %3939 = vmatprep.mubr.f32.mxu1 %v6602_v60  ;;  %5580 = vmatpush1.msk.msra.mxu1 %vm2320_vm0, %v2261_v38  ;;  %v7706_v44 = vpop.f32.mrb[254].mxu0 }
 0x3c2   : > { %v2109_v46 = vpop.f32.mrb[255].mxu0  ;;  %5599 = vmatprep.subr.msk.mxu1 %vm2320_vm0, %v2264_v37 }
 0x3c4   : > { %5562 = vmatmul.mubr.msk.f32.gmra.mrb[2].mxu1 %vm2265_vm1, %v7608_v62  ;;  %v6334_v62 = vld [vmem:[%s6914_s5 + $0x44] ss:$8 sps:$4 sm:$0xff]  }
 0x3c5   : > { %3945 = vmatprep.mubr.f32.mxu1 %v6602_v60  ;;  %4999 = vmatprep.subr.bf16.mxu0 %v6334_v62  ;;  %v6352_v62 = vld [vmem:[%s6914_s5 + $0xa4] ss:$8 sps:$4 sm:$0xff]  }
 0x3c6   : > { %5000 = vmatpush1.bf16.msra.mxu0 %v6332_v1  ;;  %v6350_v1 = vld [vmem:[%s6914_s5 + $0xa0] ss:$8 sps:$4 sm:$0xff]  }
 0x3c7   : > { %v7712_v43 = vpop.f32.mrb[0].mxu0  ;;  %5001 = vmatprep.subr.bf16.mxu0 %v6337_v19 }
 0x3c8   : > { %5563 = vmatmul.mubr.msk.f32.gmra.mrb[4].mxu1 %vm2265_vm1, %v7614_v42  ;;  %v2114_v27 = vpop.f32.mrb[1].mxu0 }
 0x3c9   : > { %3951 = vmatprep.mubr.f32.mxu1 %v6602_v60  ;;  %v7717_v24 = vpop.f32.mrb[2].mxu0 }
 0x3ca   : > { %v2117_v41 = vpop.f32.mrb[3].mxu0 }
 0x3cc   : > { %5564 = vmatmul.mubr.msk.f32.gmra.mrb[6].mxu1 %vm2265_vm1, %v7619_v3 }
 0x3cd   : > { %3957 = vmatprep.mubr.f32.mxu1 %v6602_v60 }
 0x3cf   : > { %v7722_v50 = vpop.f32.mrb[4].mxu0 }
 0x3d0   : > { %5565 = vmatmul.mubr.msk.f32.gmra.mrb[8].mxu1 %vm2265_vm1, %v7624_v5  ;;  %v2122_v52 = vpop.f32.mrb[5].mxu0 }
 0x3d1   : > { %3963 = vmatprep.mubr.f32.mxu1 %v6602_v60  ;;  %v7727_v49 = vpop.f32.mrb[6].mxu0 }
 0x3d2   : > { %v2125_v30 = vpop.f32.mrb[7].mxu0 }
 0x3d4   : > { %5566 = vmatmul.mubr.msk.f32.gmra.mrb[10].mxu1 %vm2265_vm1, %v7629_v54 }
 0x3d5   : > { %3969 = vmatprep.mubr.f32.mxu1 %v6602_v60 }
 0x3d7   : > { %v7732_v33 = vpop.f32.mrb[8].mxu0 }
 0x3d8   : > { %5567 = vmatmul.mubr.msk.f32.gmra.mrb[12].mxu1 %vm2265_vm1, %v7634_v6  ;;  %v2130_v47 = vpop.f32.mrb[9].mxu0 }
 0x3d9   : > { %3975 = vmatprep.mubr.f32.mxu1 %v6602_v60  ;;  %v7737_v56 = vpop.f32.mrb[10].mxu0 }
 0x3da   : > { %v2133_v58 = vpop.f32.mrb[11].mxu0 }
 0x3dc   : > { %5568 = vmatmul.mubr.msk.f32.gmra.mrb[14].mxu1 %vm2265_vm1, %v7639_v8 }
 0x3dd   : > { %3981 = vmatprep.mubr.f32.mxu1 %v6602_v60 }
 0x3df   : > { %v7742_v55 = vpop.f32.mrb[12].mxu0 }
 0x3e0   : > { %5569 = vmatmul.mubr.msk.f32.gmra.mrb[16].mxu1 %vm2265_vm1, %v7644_v7  ;;  %v2138_v39 = vpop.f32.mrb[13].mxu0 }
 0x3e1   : > { %3987 = vmatprep.mubr.f32.mxu1 %v6602_v60  ;;  %v7747_v36 = vpop.f32.mrb[14].mxu0 }
 0x3e2   : > { %v2141_v59 = vpop.f32.mrb[15].mxu0 }
 0x3e4   : > { %5570 = vmatmul.mubr.msk.f32.gmra.mrb[18].mxu1 %vm2265_vm1, %v7651_v14 }
 0x3e5   : > { %3993 = vmatprep.mubr.f32.mxu1 %v6602_v60 }
 0x3e7   : > { %v7752_v63 = vpop.f32.mrb[16].mxu0 }
 0x3e8   : > { %5571 = vmatmul.mubr.msk.f32.gmra.mrb[20].mxu1 %vm2265_vm1, %v7656_v16  ;;  %v2146_v53 = vpop.f32.mrb[17].mxu0 }
 0x3e9   : > { %3999 = vmatprep.mubr.f32.mxu1 %v6602_v60  ;;  %v7759_v48 = vpop.f32.mrb[18].mxu0  ;;  %v6349_v53 = vld [vmem:[%s6914_s5 + $0x94] ss:$8 sps:$4 sm:$0xff]  }
 0x3ea   : > { %v2149_v42 = vpop.f32.mrb[19].mxu0 }
 0x3ec   : > { %5572 = vmatmul.mubr.msk.f32.gmra.mrb[22].mxu1 %vm2265_vm1, %v7661_v0  ;;  %v6335_v0 = vld [vmem:[%s6914_s5 + $0x50] ss:$8 sps:$4 sm:$0xff]  }
 0x3ed   : > { %4005 = vmatprep.mubr.f32.mxu1 %v6602_v60  ;;  %5002 = vmatpush1.bf16.msra.mxu0 %v6335_v0 }
 0x3ee   : > { %5003 = vmatprep.subr.bf16.mxu0 %v6340_v23 }
 0x3ef   : > { %v7764_v45 = vpop.f32.mrb[20].mxu0 }
 0x3f0   : > { %5573 = vmatmul.mubr.msk.f32.gmra.mrb[24].mxu1 %vm2265_vm1, %v7666_v25  ;;  %v2154_v3 = vpop.f32.mrb[21].mxu0 }
 0x3f1   : > { %4011 = vmatprep.mubr.f32.mxu1 %v6602_v60  ;;  %v7769_v4 = vpop.f32.mrb[22].mxu0 }
 0x3f2   : > { %v2157_v5 = vpop.f32.mrb[23].mxu0 }
 0x3f3   : > { %v6355_v5 = vld [vmem:[%s6914_s5 + $0xb4] ss:$8 sps:$4 sm:$0xff]  }
 0x3f4   : > { %5574 = vmatmul.mubr.msk.f32.gmra.mrb[26].mxu1 %vm2265_vm1, %v7671_v26  ;;  %v6338_v26 = vld [vmem:[%s6914_s5 + $0x60] ss:$8 sps:$4 sm:$0xff]  }
 0x3f5   : > { %4017 = vmatprep.mubr.f32.mxu1 %v6602_v60  ;;  %5004 = vmatpush1.bf16.msra.mxu0 %v6338_v26 }
 0x3f7   : > { %v7774_v2 = vpop.f32.mrb[24].mxu0 }
 0x3f8   : > { %5575 = vmatmul.mubr.msk.f32.gmra.mrb[28].mxu1 %vm2265_vm1, %v7676_v12  ;;  %v2162_v54 = vpop.f32.mrb[25].mxu0  ;;  %v6343_v12 = vld [vmem:[%s6914_s5 + $0x74] ss:$8 sps:$4 sm:$0xff]  }
 0x3f9   : > { %4023 = vmatprep.mubr.f32.mxu1 %v6602_v60  ;;  %v7779_v51 = vpop.f32.mrb[26].mxu0  ;;  %5005 = vmatprep.subr.bf16.mxu0 %v6343_v12  ;;  %v6356_v54 = vld [vmem:[%s6914_s5 + $0xc0] ss:$8 sps:$4 sm:$0xff]  }
 0x3fa   : > { %v2165_v6 = vpop.f32.mrb[27].mxu0 }
 0x3fb   : > { %v6359_v6 = vld [vmem:[%s6914_s5 + $0xd0] ss:$8 sps:$4 sm:$0xff]  }
 0x3fc   : > { %5576 = vmatmul.mubr.msk.f32.gmra.mrb[30].mxu1 %vm2265_vm1, %v7681_v32  ;;  %v6341_v32 = vld [vmem:[%s6914_s5 + $0x70] ss:$8 sps:$4 sm:$0xff]  }
 0x3fd   : > { %4029 = vmatprep.mubr.f32.mxu1 %v6602_v60  ;;  %5006 = vmatpush1.bf16.msra.mxu0 %v6341_v32 }
 0x3ff   : > { %v7784_v57 = vpop.f32.mrb[28].mxu0 }
 0x400   : > { %5577 = vmatmul.mubr.msk.f32.gmra.mrb[32].mxu1 %vm2265_vm1, %v7686_v31  ;;  %v2170_v8 = vpop.f32.mrb[29].mxu0  ;;  %v6346_v31 = vld [vmem:[%s6914_s5 + $0x84] ss:$8 sps:$4 sm:$0xff]  }
 0x401   : > { %4035 = vmatprep.mubr.f32.mxu1 %v6602_v60  ;;  %v7789_v9 = vpop.f32.mrb[30].mxu0  ;;  %5007 = vmatprep.subr.bf16.mxu0 %v6346_v31  ;;  %v6362_v8 = vld [vmem:[%s6914_s5 + $0xe0] ss:$8 sps:$4 sm:$0xff]  }
 0x402   : > { %v2173_v7 = vpop.f32.mrb[31].mxu0  ;;  %5008 = vmatpush1.bf16.msra.mxu0 %v6344_v29 }
 0x403   : > { %5009 = vmatprep.subr.bf16.mxu0 %v6349_v53  ;;  %v6365_v7 = vld [vmem:[%s6914_s5 + $0xf0] ss:$8 sps:$4 sm:$0xff]  }
 0x404   : > { %5578 = vmatmul.mubr.msk.f32.gmra.mrb[34].mxu1 %vm2265_vm1, %v7691_v28 }
 0x405   : > { %4202 = vmatprep.mubr.f32.mxu1 %v6602_v60 }
 0x407   : > { %v7795_v61 = vpop.f32.mrb[32].mxu0 }
 0x408   : > { %5581 = vmatmul.mubr.msk.f32.vlgmr.msra.gmra.mrb[0].mxu1 %vm2265_vm1, %v7697_v40  ;;  %v2178_v11 = vpop.f32.mrb[33].mxu0 }
 0x409   : > { %4208 = vmatprep.mubr.f32.mxu1 %v6602_v60  ;;  %5600 = vmatpush1.msk.msra.mxu1 %vm2320_vm0, %v2263_v10  ;;  %v7801_v14 = vpop.f32.mrb[34].mxu0 }
 0x40a   : > { %v2181_v13 = vpop.f32.mrb[35].mxu0 }
 0x40c   : > { %5582 = vmatmul.mubr.msk.f32.gmra.mrb[2].mxu1 %vm2265_vm1, %v7706_v44 }
 0x40d   : > { %4214 = vmatprep.mubr.f32.mxu1 %v6602_v60 }
 0x40f   : > { %v7806_v16 = vpop.f32.mrb[36].mxu0 }
 0x410   : > { %5583 = vmatmul.mubr.msk.f32.gmra.mrb[4].mxu1 %vm2265_vm1, %v7712_v43  ;;  %v2186_v17 = vpop.f32.mrb[37].mxu0 }
 0x411   : > { %4220 = vmatprep.mubr.f32.mxu1 %v6602_v60  ;;  %v7813_v25 = vpop.f32.mrb[38].mxu0 }
 0x412   : > { %v2189_v20 = vpop.f32.mrb[39].mxu0 }
 0x414   : > { %5584 = vmatmul.mubr.msk.f32.gmra.mrb[6].mxu1 %vm2265_vm1, %v7717_v24 }
 0x415   : > { %4226 = vmatprep.mubr.f32.mxu1 %v6602_v60 }
 0x417   : > { %v7821_v22 = vpop.f32.mrb[40].mxu0 }
 0x418   : > { %5585 = vmatmul.mubr.msk.f32.gmra.mrb[8].mxu1 %vm2265_vm1, %v7722_v50  ;;  %v2194_v34 = vpop.f32.mrb[41].mxu0 }
 0x419   : > { %4232 = vmatprep.mubr.f32.mxu1 %v6602_v60  ;;  %v7828_v15 = vpop.f32.mrb[42].mxu0 }
 0x41a   : > { %v2197_v28 = vpop.f32.mrb[43].mxu0 }
 0x41c   : > { %5586 = vmatmul.mubr.msk.f32.gmra.mrb[10].mxu1 %vm2265_vm1, %v7727_v49 }
 0x41d   : > { %4238 = vmatprep.mubr.f32.mxu1 %v6602_v60 }
 0x41f   : > { %v2200_v38 = vpop.f32.mrb[44].mxu0 }
 0x420   : > { %5587 = vmatmul.mubr.msk.f32.gmra.mrb[12].mxu1 %vm2265_vm1, %v7732_v33  ;;  %v2202_v40 = vpop.f32.mrb[45].mxu0 }
 0x421   : > { %4244 = vmatprep.mubr.f32.mxu1 %v6602_v60  ;;  %v2203_v37 = vpop.f32.mrb[46].mxu0 }
 0x422   : > { %v2205_v21 = vpop.f32.mrb[47].mxu0 }
 0x424   : > { %5588 = vmatmul.mubr.msk.f32.gmra.mrb[14].mxu1 %vm2265_vm1, %v7737_v56 }
 0x425   : > { %4250 = vmatprep.mubr.f32.mxu1 %v6602_v60 }
 0x427   : > { %v2208_v18 = vpop.f32.mrb[48].mxu0 }
 0x428   : > { %5589 = vmatmul.mubr.msk.f32.gmra.mrb[16].mxu1 %vm2265_vm1, %v7742_v55  ;;  %v2210_v35 = vpop.f32.mrb[49].mxu0 }
 0x429   : > { %4256 = vmatprep.mubr.f32.mxu1 %v6602_v60  ;;  %v2211_v44 = vpop.f32.mrb[50].mxu0 }
 0x42a   : > { %v2213_v46 = vpop.f32.mrb[51].mxu0 }
 0x42c   : > { %5590 = vmatmul.mubr.msk.f32.gmra.mrb[18].mxu1 %vm2265_vm1, %v7747_v36 }
 0x42d   : > { %4262 = vmatprep.mubr.f32.mxu1 %v6602_v60 }
 0x42f   : > { %v2216_v43 = vpop.f32.mrb[52].mxu0 }
 0x430   : > { %5591 = vmatmul.mubr.msk.f32.gmra.mrb[20].mxu1 %vm2265_vm1, %v7752_v63  ;;  %v2218_v27 = vpop.f32.mrb[53].mxu0  ;;  %v6347_v63 = vld [vmem:[%s6914_s5 + $0x90] ss:$8 sps:$4 sm:$0xff]  }
 0x431   : > { %4268 = vmatprep.mubr.f32.mxu1 %v6602_v60  ;;  %v2219_v24 = vpop.f32.mrb[54].mxu0  ;;  %5010 = vmatpush1.bf16.msra.mxu0 %v6347_v63 }
 0x432   : > { %v2221_v41 = vpop.f32.mrb[55].mxu0  ;;  %5011 = vmatprep.subr.bf16.mxu0 %v6352_v62 }
 0x434   : > { %5592 = vmatmul.mubr.msk.f32.gmra.mrb[22].mxu1 %vm2265_vm1, %v7759_v48  ;;  %v4618_v48 = vlaneseq }
 0x435   : > { %4274 = vmatprep.mubr.f32.mxu1 %v6602_v60  ;;  %5012 = vmatpush1.bf16.msra.mxu0 %v6350_v1 }
 0x436   : > { %v7916_v42 = vshrl.u32 %v4618_v48, 7  ;;  %5013 = vmatprep.subr.bf16.mxu0 %v6355_v5  ;;  %vm5052_vm3 = vcmp.lt.s32.totalorder %v4618_v48, 256 }
 0x437   : > { %v2224_v50 = vpop.f32.mrb[56].mxu0 }
 0x438   : > { %5593 = vmatmul.mubr.msk.f32.gmra.mrb[24].mxu1 %vm2265_vm1, %v7764_v45  ;;  %v2226_v52 = vpop.f32.mrb[57].mxu0  ;;  %v7923_v45 = vld [vmem:[%s386_s20] sm:$0x3]  ;;  %v7938_v10 = vsub.s32 0, %v7916_v42  ;;  %s5661_s20 = sshll.u32 %s6666_s28, 5  ;;  %s6604_s28 = smov [#allocation11]  }
 0x439   : > { %4280 = vmatprep.mubr.f32.mxu1 %v6602_v60  ;;  %v2227_v49 = vpop.f32.mrb[58].mxu0  ;;  %s7996_s11 = scalar_lea.hbm %s8084_s13, %s5661_s20 }
 0x43a   : > { %v2229_v30 = vpop.f32.mrb[59].mxu0 }
 0x43c   : > { %5594 = vmatmul.mubr.msk.f32.gmra.mrb[26].mxu1 %vm2265_vm1, %v7769_v4  ;;  %v6353_v4 = vld [vmem:[%s6914_s5 + $0xb0] ss:$8 sps:$4 sm:$0xff]  }
 0x43d   : > { %4286 = vmatprep.mubr.f32.mxu1 %v6602_v60  ;;  %5014 = vmatpush1.bf16.msra.mxu0 %v6353_v4 }
 0x43f   : > { %v2232_v33 = vpop.f32.mrb[60].mxu0 }
 0x440   : > { %5595 = vmatmul.mubr.msk.f32.gmra.mrb[28].mxu1 %vm2265_vm1, %v7774_v2  ;;  %v2234_v47 = vpop.f32.mrb[61].mxu0  ;;  %v6358_v2 = vld [vmem:[%s6914_s5 + $0xc4] ss:$8 sps:$4 sm:$0xff]  }
 0x441   : > { %4292 = vmatprep.mubr.f32.mxu1 %v6602_v60  ;;  %v2235_v56 = vpop.f32.mrb[62].mxu0  ;;  %5015 = vmatprep.subr.bf16.mxu0 %v6358_v2 }
 0x442   : > { %v2237_v58 = vpop.f32.mrb[63].mxu0  ;;  %5016 = vmatpush1.bf16.msra.mxu0 %v6356_v54 }
 0x444   : > { %5596 = vmatmul.mubr.msk.f32.gmra.mrb[30].mxu1 %vm2265_vm1, %v7779_v51  ;;  %v6361_v51 = vld [vmem:[%s6914_s5 + $0xd4] ss:$8 sps:$4 sm:$0xff]  }
 0x445   : > { %4298 = vmatprep.mubr.f32.mxu1 %v6602_v60  ;;  %5017 = vmatprep.subr.bf16.mxu0 %v6361_v51 }
 0x446   : > { %5018 = vmatpush1.bf16.msra.mxu0 %v6359_v6 }
 0x447   : > { %v2240_v55 = vpop.f32.mrb[64].mxu0 }
 0x448   : > { %5597 = vmatmul.mubr.msk.f32.gmra.mrb[32].mxu1 %vm2265_vm1, %v7784_v57  ;;  %v2242_v39 = vpop.f32.mrb[65].mxu0  ;;  %v6364_v57 = vld [vmem:[%s6914_s5 + $0xe4] ss:$8 sps:$4 sm:$0xff]  }
 0x449   : > { %4304 = vmatprep.mubr.f32.mxu1 %v6602_v60  ;;  %v2243_v36 = vpop.f32.mrb[66].mxu0  ;;  %5019 = vmatprep.subr.bf16.mxu0 %v6364_v57 }
 0x44a   : > { %v2245_v59 = vpop.f32.mrb[67].mxu0  ;;  %5020 = vmatpush1.bf16.msra.mxu0 %v6362_v8 }
 0x44c   : > { %5598 = vmatmul.mubr.msk.f32.gmra.mrb[34].mxu1 %vm2265_vm1, %v7789_v9  ;;  %v6367_v9 = vld [vmem:[%s6914_s5 + $0xf4] ss:$8 sps:$4 sm:$0xff]   ;;  %s459_s5 = scalar_lea.vmem [#allocation11], %s6905_s10  ;;  %s6522_s10 = sshll.u32 %s6604_s28, 4  ;;  %s6523_s10 = int_to_ptr.vmem [resolvable:$false] %s6522_s10 }
 0x44d   : > { %4471 = vmatprep.mubr.f32.mxu1 %v6602_v60  ;;  %5021 = vmatprep.subr.bf16.mxu0 %v6367_v9  ;;  %s5070_s8 = sshll.u32 %s459_s5, 4  ;;  %s6524_s18 = scalar_lea.vmem %s6523_s10, 64  ;;  %s7998_s8 = int_to_ptr.vmem [resolvable:$true] %s5070_s8 }
 0x44e   : > { %5022 = vmatpush1.bf16.msra.mxu0 %v6365_v7  ;;  %s6518_s17 = scalar_lea.vmem %s7998_s8, 32  ;;  %p6525_p5 = scmp.lt.s32.totalorder %s7998_s8, %s6523_s10 }
 0x44f   : > { %p6519_p12 = scmp.ne.s32.totalorder %s7998_s8, %s6518_s17  ;;  %p6526_p3 = scmp.lt.s32.totalorder %s6524_s18, %s6518_s17 }
 0x450   : > { %5601 = vmatmul.mubr.msk.f32.vlgmr.msra.gmra.mrb[0].mxu1 %vm2265_vm1, %v7795_v61  ;;  %v4616_v61 = vld [vmem:[%s377_s21] sm:$0x3]  ;;  %s8083_s21 = sld [smem:[#allocation20_spill]] }
 0x451   : > { %4477 = vmatprep.mubr.f32.mxu1 %v6602_v60  ;;  %v7943_v11 = vrot.slane %v4616_v61, %v7938_v10  ;;  %p6527_p6 = por %p6526_p3, %p6525_p5 }
 0x454   : > { %5602 = vmatmul.mubr.msk.f32.gmra.mrb[2].mxu1 %vm2265_vm1, %v7801_v14 }
 0x455   : > { %4483 = vmatprep.mubr.f32.mxu1 %v6602_v60 }
 0x456   : > { %p8085_p2 = scmp.ne.s32.totalorder %s8083_s21, 0 }
 0x458   : > { %5603 = vmatmul.mubr.msk.f32.gmra.mrb[4].mxu1 %vm2265_vm1, %v7806_v16  ;;  %p6520_p4 = pnand %p6519_p12, %p8085_p2 }
 0x459   : > { %4489 = vmatprep.mubr.f32.mxu1 %v6602_v60 }
 0x45a   : > { %p6521_p0 = pneg %p6520_p4 }
 0x45c   : > { %5604 = vmatmul.mubr.msk.f32.gmra.mrb[6].mxu1 %vm2265_vm1, %v7813_v25  ;;  %p6528_p9 = pnand %p6527_p6, %p6521_p0 }
 0x45d   : > { %4495 = vmatprep.mubr.f32.mxu1 %v6602_v60 }
 0x460   : > { %5605 = vmatmul.mubr.msk.f32.gmra.mrb[8].mxu1 %vm2265_vm1, %v7821_v22 }
 0x461   : > { %4501 = vmatprep.mubr.f32.mxu1 %v6602_v60 }
 0x464   : > { %5606 = vmatmul.mubr.msk.f32.gmra.mrb[10].mxu1 %vm2265_vm1, %v7828_v15 }
 0x465   : > { %4507 = vmatprep.mubr.f32.mxu1 %v6602_v60 }
 0x468   : > { %5607 = vmatmul.mubr.msk.f32.gmra.mrb[12].mxu1 %vm2265_vm1, %v2200_v38 }
 0x469   : > { %4513 = vmatprep.mubr.f32.mxu1 %v6602_v60 }
 0x46c   : > { %5608 = vmatmul.mubr.msk.f32.gmra.mrb[14].mxu1 %vm2265_vm1, %v2203_v37 }
 0x46d   : > { %4519 = vmatprep.mubr.f32.mxu1 %v6602_v60 }
 0x470   : > { %5609 = vmatmul.mubr.msk.f32.gmra.mrb[16].mxu1 %vm2265_vm1, %v2208_v18 }
 0x471   : > { %4525 = vmatprep.mubr.f32.mxu1 %v6602_v60 }
 0x474   : > { %5610 = vmatmul.mubr.msk.f32.gmra.mrb[18].mxu1 %vm2265_vm1, %v2211_v44 }
 0x475   : > { %4531 = vmatprep.mubr.f32.mxu1 %v6602_v60 }
 0x478   : > { %5611 = vmatmul.mubr.msk.f32.gmra.mrb[20].mxu1 %vm2265_vm1, %v2216_v43 }
 0x479   : > { %4537 = vmatprep.mubr.f32.mxu1 %v6602_v60 }
 0x47c   : > { %5612 = vmatmul.mubr.msk.f32.gmra.mrb[22].mxu1 %vm2265_vm1, %v2219_v24 }
 0x47d   : > { %4543 = vmatprep.mubr.f32.mxu1 %v6602_v60 }
 0x480   : > { %5613 = vmatmul.mubr.msk.f32.gmra.mrb[24].mxu1 %vm2265_vm1, %v2224_v50 }
 0x481   : > { %4549 = vmatprep.mubr.f32.mxu1 %v6602_v60 }
 0x484   : > { %5614 = vmatmul.mubr.msk.f32.gmra.mrb[26].mxu1 %vm2265_vm1, %v2227_v49 }
 0x485   : > { %4555 = vmatprep.mubr.f32.mxu1 %v6602_v60 }
 0x488   : > { %5615 = vmatmul.mubr.msk.f32.gmra.mrb[28].mxu1 %vm2265_vm1, %v2232_v33 }
 0x489   : > { %4561 = vmatprep.mubr.f32.mxu1 %v6602_v60 }
 0x48c   : > { %5616 = vmatmul.mubr.msk.f32.gmra.mrb[30].mxu1 %vm2265_vm1, %v2235_v56 }
 0x48d   : > { %4567 = vmatprep.mubr.f32.mxu1 %v6602_v60 }
 0x490   : > { %5617 = vmatmul.mubr.msk.f32.gmra.mrb[32].mxu1 %vm2265_vm1, %v2240_v55 }
 0x491   : > { %4573 = vmatprep.mubr.f32.mxu1 %v6602_v60  ;;  %v7919_v60 = vsub.s32 1, %v7916_v42 }
 0x493   : > { %v4709_v3 = vrot.slane %v7923_v45, %v7919_v60  ;;  %v7946_v13 = vrot.slane %v4616_v61, %v7919_v60 }
 0x494   : > { %5618 = vmatmul.mubr.msk.f32.gmra.mrb[34].mxu1 %vm2265_vm1, %v2243_v36 }
 0x495   : > { %5619 = vmatprep.mubr.msk.f32.mxu1 %vm4711_vm2, %v4709_v3 }
 0x523   : > { %v4473_v14 = vpop.f32.mrb[0].mxu1 }
 0x524   : > { %v4475_v16 = vpop.f32.mrb[1].mxu1  ;;  %v4628_v17 = vadd.f32 %v7943_v11, %v4473_v14 }
 0x525   : > { %v4629_v0 = vadd.f32 %v7946_v13, %v4475_v16 }
 0x526   : > { %v4664_v23 = vmax.f32 %v4628_v17, 0.0 }
 0x527   : > { %v4479_v19 = vpop.f32.mrb[2].mxu1  ;;  %v4665_v22 = vmax.f32 %v4629_v0, 0.0 }
 0x528   : > { %v4630_v25 = vadd.f32 %v7943_v11, %v4479_v19  ;;  %v4481_v20 = vpop.f32.mrb[3].mxu1 }
 0x529   : > { %v4631_v26 = vadd.f32 %v7946_v13, %v4481_v20 }
 0x52a   : > { %v4666_v12 = vmax.f32 %v4630_v25, 0.0 }
 0x52b   : > { %v4667_v32 = vmax.f32 %v4631_v26, 0.0  ;;  %v4485_v34 = vpop.f32.mrb[4].mxu1 }
 0x52c   : > { %v5664_v31 = vpack.c.bf16 %v4666_v12, %v4664_v23  ;;  %v4487_v15 = vpop.f32.mrb[5].mxu1  ;;  %v4632_v29 = vadd.f32 %v7943_v11, %v4485_v34 }
 0x52d   : > { %v5662_v28 = vpack.c.bf16 %v4667_v32, %v4665_v22  ;;  %v4633_v38 = vadd.f32 %v7946_v13, %v4487_v15 }
 0x52e   : > { %v4668_v35 = vmax.f32 %v4632_v29, 0.0 }
 0x52f   : > { %v4491_v40 = vpop.f32.mrb[6].mxu1  ;;  %5663 = vmatprep.subr.bf16.mxu1 %v5662_v28  ;;  %v4669_v46 = vmax.f32 %v4633_v38, 0.0 }
 0x530   : > { %v4634_v37 = vadd.f32 %v7943_v11, %v4491_v40  ;;  %v4493_v21 = vpop.f32.mrb[7].mxu1  ;;  %5665 = vmatpush1.bf16.msra.mxu1 %v5664_v31 }
 0x531   : > { %v4635_v18 = vadd.f32 %v7946_v13, %v4493_v21 }
 0x532   : > { %v4670_v44 = vmax.f32 %v4634_v37, 0.0 }
 0x533   : > { %v4671_v43 = vmax.f32 %v4635_v18, 0.0  ;;  %v4497_v27 = vpop.f32.mrb[8].mxu1 }
 0x534   : > { %v5668_v24 = vpack.c.bf16 %v4670_v44, %v4668_v35  ;;  %v4499_v41 = vpop.f32.mrb[9].mxu1  ;;  %v4636_v52 = vadd.f32 %v7943_v11, %v4497_v27 }
 0x535   : > { %v5666_v50 = vpack.c.bf16 %v4671_v43, %v4669_v46  ;;  %v4637_v49 = vadd.f32 %v7946_v13, %v4499_v41 }
 0x536   : > { %v4672_v58 = vmax.f32 %v4636_v52, 0.0 }
 0x537   : > { %v4503_v30 = vpop.f32.mrb[10].mxu1  ;;  %5667 = vmatprep.subr.bf16.mxu1 %v5666_v50  ;;  %v4673_v39 = vmax.f32 %v4637_v49, 0.0 }
 0x538   : > { %v4638_v33 = vadd.f32 %v7943_v11, %v4503_v30  ;;  %v4505_v47 = vpop.f32.mrb[11].mxu1  ;;  %5669 = vmatpush1.bf16.msra.mxu1 %v5668_v24 }
 0x539   : > { %v4639_v56 = vadd.f32 %v7946_v13, %v4505_v47 }
 0x53a   : > { %v4674_v55 = vmax.f32 %v4638_v33, 0.0 }
 0x53b   : > { %v4675_v36 = vmax.f32 %v4639_v56, 0.0  ;;  %v4509_v59 = vpop.f32.mrb[12].mxu1 }
 0x53c   : > { %v5672_v63 = vpack.c.bf16 %v4674_v55, %v4672_v58  ;;  %v4511_v53 = vpop.f32.mrb[13].mxu1  ;;  %v4640_v62 = vadd.f32 %v7943_v11, %v4509_v59 }
 0x53d   : > { %v5670_v1 = vpack.c.bf16 %v4675_v36, %v4673_v39  ;;  %v4641_v3 = vadd.f32 %v7946_v13, %v4511_v53 }
 0x53e   : > { %v4676_v51 = vmax.f32 %v4640_v62, 0.0 }
 0x53f   : > { %v4515_v4 = vpop.f32.mrb[14].mxu1  ;;  %5671 = vmatprep.subr.bf16.mxu1 %v5670_v1  ;;  %v4677_v57 = vmax.f32 %v4641_v3, 0.0 }
 0x540   : > { %v4642_v5 = vadd.f32 %v7943_v11, %v4515_v4  ;;  %v4517_v2 = vpop.f32.mrb[15].mxu1  ;;  %5673 = vmatpush1.bf16.msra.mxu1 %v5672_v63 }
 0x541   : > { %v4643_v54 = vadd.f32 %v7946_v13, %v4517_v2 }
 0x542   : > { %v4678_v6 = vmax.f32 %v4642_v5, 0.0 }
 0x543   : > { %v4679_v8 = vmax.f32 %v4643_v54, 0.0  ;;  %v4521_v9 = vpop.f32.mrb[16].mxu1 }
 0x544   : > { %v5676_v7 = vpack.c.bf16 %v4678_v6, %v4676_v51  ;;  %v4523_v61 = vpop.f32.mrb[17].mxu1  ;;  %v4644_v16 = vadd.f32 %v7943_v11, %v4521_v9 }
 0x545   : > { %v5674_v14 = vpack.c.bf16 %v4679_v8, %v4677_v57  ;;  %v4645_v17 = vadd.f32 %v7946_v13, %v4523_v61 }
 0x546   : > { %v4680_v26 = vmax.f32 %v4644_v16, 0.0 }
 0x547   : > { %v4527_v0 = vpop.f32.mrb[18].mxu1  ;;  %5675 = vmatprep.subr.bf16.mxu1 %v5674_v14  ;;  %v4681_v12 = vmax.f32 %v4645_v17, 0.0 }
 0x548   : > { %v4646_v19 = vadd.f32 %v7943_v11, %v4527_v0  ;;  %v4529_v25 = vpop.f32.mrb[19].mxu1  ;;  %5677 = vmatpush1.bf16.msra.mxu1 %v5676_v7 }
 0x549   : > { %v4647_v20 = vadd.f32 %v7946_v13, %v4529_v25 }
 0x54a   : > { %v4682_v23 = vmax.f32 %v4646_v19, 0.0 }
 0x54b   : > { %v4683_v22 = vmax.f32 %v4647_v20, 0.0  ;;  %v4533_v32 = vpop.f32.mrb[20].mxu1 }
 0x54c   : > { %v5680_v34 = vpack.c.bf16 %v4682_v23, %v4680_v26  ;;  %v4535_v31 = vpop.f32.mrb[21].mxu1  ;;  %v4648_v28 = vadd.f32 %v7943_v11, %v4533_v32 }
 0x54d   : > { %v5678_v15 = vpack.c.bf16 %v4683_v22, %v4681_v12  ;;  %v4649_v29 = vadd.f32 %v7946_v13, %v4535_v31 }
 0x54e   : > { %v4684_v18 = vmax.f32 %v4648_v28, 0.0 }
 0x54f   : > { %v4539_v38 = vpop.f32.mrb[22].mxu1  ;;  %5679 = vmatprep.subr.bf16.mxu1 %v5678_v15  ;;  %v4685_v44 = vmax.f32 %v4649_v29, 0.0  ;;  %v6603_v29 = vmov 1966171168  }
 0x550   : > { %v4650_v40 = vadd.f32 %v7943_v11, %v4539_v38  ;;  %v4541_v37 = vpop.f32.mrb[23].mxu1  ;;  %5681 = vmatpush1.bf16.msra.mxu1 %v5680_v34  ;;  %v4705_v34 = vrot.slane %v7923_v45, %v7938_v10  ;;  %v5036_v38 = vunpack.c.l.s4 %v6603_v29 }
 0x551   : > { %v4651_v21 = vadd.f32 %v7946_v13, %v4541_v37 }
 0x552   : > { %v4686_v35 = vmax.f32 %v4650_v40, 0.0 }
 0x553   : > { %v4687_v46 = vmax.f32 %v4651_v21, 0.0  ;;  %v4545_v43 = vpop.f32.mrb[24].mxu1  ;;  %v5037_v21 = vunpack.c.0.s8 %v5036_v38 }
 0x554   : > { %v5684_v27 = vpack.c.bf16 %v4686_v35, %v4684_v18  ;;  %v4547_v24 = vpop.f32.mrb[25].mxu1  ;;  %v4652_v50 = vadd.f32 %v7943_v11, %v4545_v43 }
 0x555   : > { %v5682_v41 = vpack.c.bf16 %v4687_v46, %v4685_v44  ;;  %v4653_v52 = vadd.f32 %v7946_v13, %v4547_v24  ;;  %v5040_v46 = vsub.s32 %v5037_v21, %v7916_v42 }
 0x556   : > { %v4688_v56 = vmax.f32 %v4652_v50, 0.0 }
 0x557   : > { %v4551_v49 = vpop.f32.mrb[26].mxu1  ;;  %5683 = vmatprep.subr.bf16.mxu1 %v5682_v41  ;;  %v4689_v55 = vmax.f32 %v4653_v52, 0.0 }
 0x558   : > { %v4654_v30 = vadd.f32 %v7943_v11, %v4551_v49  ;;  %v4553_v33 = vpop.f32.mrb[27].mxu1  ;;  %5685 = vmatpush1.bf16.msra.mxu1 %v5684_v27 }
 0x559   : > { %v4655_v47 = vadd.f32 %v7946_v13, %v4553_v33 }
 0x55a   : > { %v4690_v58 = vmax.f32 %v4654_v30, 0.0 }
 0x55b   : > { %v4691_v39 = vmax.f32 %v4655_v47, 0.0  ;;  %v4557_v36 = vpop.f32.mrb[28].mxu1 }
 0x55c   : > { %v5688_v59 = vpack.c.bf16 %v4690_v58, %v4688_v56  ;;  %v4559_v63 = vpop.f32.mrb[29].mxu1  ;;  %v4656_v1 = vadd.f32 %v7943_v11, %v4557_v36 }
 0x55d   : > { %v5686_v53 = vpack.c.bf16 %v4691_v39, %v4689_v55  ;;  %v4657_v62 = vadd.f32 %v7946_v13, %v4559_v63 }
 0x55e   : > { %v4692_v54 = vmax.f32 %v4656_v1, 0.0 }
 0x55f   : > { %v4563_v3 = vpop.f32.mrb[30].mxu1  ;;  %5687 = vmatprep.subr.bf16.mxu1 %v5686_v53  ;;  %v4693_v6 = vmax.f32 %v4657_v62, 0.0 }
 0x560   : > { %v4658_v4 = vadd.f32 %v7943_v11, %v4563_v3  ;;  %v4565_v5 = vpop.f32.mrb[31].mxu1  ;;  %5689 = vmatpush1.bf16.msra.mxu1 %v5688_v59 }
 0x561   : > { %v4659_v2 = vadd.f32 %v7946_v13, %v4565_v5 }
 0x562   : > { %v4694_v51 = vmax.f32 %v4658_v4, 0.0 }
 0x563   : > { %v4695_v57 = vmax.f32 %v4659_v2, 0.0  ;;  %v4569_v8 = vpop.f32.mrb[32].mxu1 }
 0x564   : > { %v5692_v9 = vpack.c.bf16 %v4694_v51, %v4692_v54  ;;  %v4660_v7 = vadd.f32 %v7943_v11, %v4569_v8  ;;  %v4571_v61 = vpop.f32.mrb[33].mxu1 }
 0x565   : > { %v5690_v14 = vpack.c.bf16 %v4695_v57, %v4693_v6  ;;  %v4661_v16 = vadd.f32 %v7946_v13, %v4571_v61 }
 0x566   : > { %v4696_v20 = vmax.f32 %v4660_v7, 0.0 }
 0x567   : > { %v4575_v17 = vpop.f32.mrb[34].mxu1  ;;  %5691 = vmatprep.subr.bf16.mxu1 %v5690_v14  ;;  %v4697_v23 = vmax.f32 %v4661_v16, 0.0 }
 0x568   : > { %v4662_v0 = vadd.f32 %v7943_v11, %v4575_v17  ;;  %v4577_v19 = vpop.f32.mrb[35].mxu1  ;;  %5693 = vmatpush1.bf16.msra.mxu1 %v5692_v9 }
 0x569   : > { %v4663_v25 = vadd.f32 %v7946_v13, %v4577_v19  ;;  %v4819_v13 = vld [vmem:[%s404_s30] sm:$0x3] }
 0x56a   : > { %v4698_v26 = vmax.f32 %v4662_v0, 0.0  ;;  %v4984_v40 = vrot.slane %v4819_v13, %v7938_v10  ;;  %v4988_v37 = vrot.slane %v4819_v13, %v7919_v60 }
 0x56b   : > { %v4699_v12 = vmax.f32 %v4663_v25, 0.0 }
 0x56c   : > { %v5696_v22 = vpack.c.bf16 %v4698_v26, %v4696_v20 }
 0x56d   : > { %v5694_v32 = vpack.c.bf16 %v4699_v12, %v4697_v23 }
 0x56f   : > { %5695 = vmatprep.subr.bf16.mxu1 %v5694_v32 }
 0x570   : > { %5697 = vmatpush1.bf16.msra.mxu1 %v5696_v22 }
 0x573   : > { %4779 = vmatmul.mubr.f32.vlgmr.msra.gmra.mrb[36].mxu1 %v4705_v34 }
 0x646   : > { %v4780_v31 = vpop.f32.mrb[36].mxu1 }
 0x647   : > { %v4782_v15 = vpop.f32.mrb[37].mxu1  ;;  %v4785_v28 = vpack.c.bf16 %v4780_v31, %v4780_v31 }
 0x648   : > { %v4786_v11 = vpack.c.bf16 %v4782_v15, %v4782_v15 }
 0x64a   : > { %5023 = vmatprep.mubr.bf16.mxu0 %v4786_v11 }
 0x64b   : > { %5024 = vmatmul.mubr.bf16.vlgmr.msra.gmra.mrb[68].mxu0 %v4785_v28 }
 0x71e   : > { %v5025_v45 = vpop.f32.mrb[68].mxu0 }
 0x71f   : > { %v5026_v18 = vadd.f32 %v5025_v45, %v4984_v40  ;;  %v5027_v35 = vpop.f32.mrb[69].mxu0 }
 0x720   : > { %v5028_v44 = vadd.f32 %v5027_v35, %v4988_v37  ;;  %v5029_v43 = vpop.f32.mrb[70].mxu0 }
 0x721   : > { %v5030_v27 = vpop.f32.mrb[71].mxu0 }
 0x722   : > { %v5034_v24 = vcombine.low %v5026_v18, %v5028_v44 }
 0x724   : > { %v5041_v41 = vrot.slane %v5034_v24, %v5040_v46 }
 0x726   : > { %v5048_v10 = vrot.slane %v5041_v41, %v5040_v46 }
 0x728   : > { %5054 = vst.msk [vmem:[%s459_s5] sm:$0x3] %vm5052_vm3, %v5048_v10 }
 0x729   : > { %6531 = shalt.err (!%p6528_p9)
}
 0x72a   : > { %s6532_s9 = scalar_lea.hbm %s7996_s11, 32  ;;  %s6536_s12 = scalar_lea.hbm %s8084_s13, 64 }
 0x72b   : > { %p6533_p11 = scmp.ne.s32.totalorder %s7996_s11, %s6532_s9  ;;  %p6537_p8 = scmp.lt.u32.totalorder %s7996_s11, %s8084_s13 }
 0x72c   : > { %p6538_p13 = scmp.lt.u32.totalorder %s6536_s12, %s6532_s9  ;;  %p6540_p12 = scmp.lt.u32.totalorder %s6532_s9, %s7996_s11 }
 0x72d   : > { %p6534_p7 = pnand %p6533_p11, %p8085_p2 }
 0x72e   : > { %p6539_p1 = por %p6538_p13, %p6537_p8 }
 0x72f   : > { %p6535_p10 = pneg %p6534_p7 }
 0x730   : > { %p6541_p4 = por %p6540_p12, %p6539_p1 }
 0x732   : > { %p6542_p0 = pnand %p6541_p4, %p6535_p10 }
 0x734   : > { %6545 = shalt.err (!%p6542_p0)
}
 0x735   : > { %6000 = dma.vmem_to_hbm [thread:$0]  (%p8085_p2), %s7998_s8, 32, %s7996_s11, %s5056_s24  }
 0x736 PF: > { %s8086_s23 = sld [smem:[#allocation16_spill]]  ;;  %s8087_s3 = sld [smem:[#allocation21_spill]] }
 0x737   : > { %p8089_p3 = scmp.ge.s32.totalorder %s6592_s27, 2 }
 0x73c   : > { %s5082_s16 = sand.u32 1, %s8086_s23   ;;  %p8088_p5 = scmp.ne.s32.totalorder %s8087_s3, 0 }
 0x73d   : > { %s5083_s19 = scalar_lea.sflag [#allocation4], %s5082_s16 }
 0x73e   : > { %p6019_p6 = pnand %p8089_p3, %p8088_p5 }
 0x740   : > { %6575 = dma.done.wait (!%p6019_p6), %s5083_s19, 32  }
 0x741   : > { %6577 = vsyncadd (!%p6019_p6), %s5083_s19, 4294967264  ;;  %s8090_s27 = sld [smem:[#allocation18_spill]]  ;;  %s8091_s7 = sld [smem:[#allocation17_spill]] }
 0x742   : > { %s8092_s26 = sld [smem:[#allocation19_spill]]  ;;  %s8093_s24 = smov %s6584_s25 }
 0x747   : > { %p26_p9 = scmp.ge.s32.totalorder %s8090_s27, 4   ;;  %s8094_s25 = smov %s8091_s7 }
 0x749   :  { %28 = sbr.rel (!%p26_p9) target bundleno = 14 (0xe), region = 144 }
 0x750   :  { %5088 = vsyncpa [#allocation3], 1 }
 0x751   :  { %5090 = vsyncpa [#allocation3 + $0x1], 1 }
 0x752   :  { %5091 = vsyncpa [#allocation6], 1 }
 0x753   :  { %5093 = vsyncpa [#allocation6 + $0x1], 1 }
 0x754   :  { %5094 = vsyncpa [#allocation9], 1 }
 0x755   :  { %5096 = vsyncpa [#allocation9 + $0x1], 1 }
 0x756   :  { %5097 = vsyncpa [#allocation4], 1 }
 0x757   :  { %5099 = vsyncpa [#allocation4 + $0x1], 1 }

</bundles_post_ra>
